<compile_context>
chip_gen: v6e
topology: v6e:2x2x1
jax: 0.10.0
libtpu: 0.0.40
codegen_flags: <defaults>
</compile_context>

<pallas_src>
import functools

import jax
import jax.numpy as jnp
import numpy as np
from jax.experimental import pallas as pl
from jax.experimental.pallas import tpu as pltpu

_MAX_TILE_B = 256   # batch-tile cap (review: >=128 on v5e, 256 on v6e/v7x)


def _round_up(x, m):
    return ((x + m - 1) // m) * m


def _sigmoid(x):
    return 1.0 / (1.0 + jnp.exp(-x))


def bilstm_kernel(ids_ref, lens_ref, ew_ref, whh_ref, b_ref, out_ref, xw_ref,
                  *, T, H, n_char, ndir):
    """Length-masked LSTM over one batch tile.

    ndir == 2 : both directions fused in this program (state = [h_fwd|h_bwd]).
    ndir == 1 : this program handles one direction (grid axis 1 picks it).

    ids_ref : (ndir, T*Bt, 1) int32  char ids, time-major within the tile;
              slot 0 = this program's primary time order (fwd), slot 1 (only
              when ndir==2) = reversed time order for the backward direction.
    lens_ref: (Bt, 1) int32          sequence lengths for this batch tile
    ew_ref  : (ndir*n_char, 4*SW) bf16  E @ W_ih, gate-major packed columns
    whh_ref : (SW, 4*SW) bf16        recurrent weights (block-diag if ndir==2)
    b_ref   : (1, 4*SW) f32          combined b_ih+b_hh (g cols pre-scaled 2x)
    out_ref : (Bt, SW) f32           final hidden state(s)
    xw_ref  : (T*Bt, 4*SW) f32       VMEM scratch: hoisted input projection
    where SW = ndir * H.
    """
    Bt, SW = out_ref.shape
    TB = T * Bt
    NC = n_char

    # ---- Embedding lookup + input projection for ALL steps (and both
    #      directions when fused) as ONE MXU matmul: onehot(ids) @ (E@W_ih).
    col = jax.lax.broadcasted_iota(jnp.int32, (TB, ndir * NC), 1)
    onehot = col == ids_ref[0]                       # (TB, ndir*NC) vs (TB, 1)
    if ndir == 2:
        onehot = jnp.logical_or(onehot, col == (ids_ref[1] + NC))
    xw_ref[...] = (
        jnp.dot(onehot.astype(jnp.bfloat16), ew_ref[...],
                preferred_element_type=jnp.float32)
        + b_ref[...])

    whh = whh_ref[...]                               # hoisted out of the loop
    lens_sw = jnp.broadcast_to(lens_ref[...], (Bt, SW))      # hoisted broadcast
    if ndir == 2:
        colh = jax.lax.broadcasted_iota(jnp.int32, (Bt, SW), 1)
    else:
        is_fwd = pl.program_id(1) == 0

    h = jnp.zeros((Bt, SW), jnp.bfloat16)            # bf16 recurrent state
    c = jnp.zeros((Bt, SW), jnp.float32)             # cell state stays f32

    # ---- Fully unrolled time recurrence (T static). Only the h@W_hh matmul
    #      and the gate elementwise math sit on the serial chain.
    for t in range(T):
        row = pl.ds(t * Bt, Bt)
        gates = xw_ref[row, :] + jnp.dot(h, whh,
                                         preferred_element_type=jnp.float32)
        # One full-width sigmoid (EUP exp + approx reciprocal); g gate via
        # tanh(z) = 2*sigmoid(2z) - 1 (the 2x lives in the packed columns).
        s = pl.reciprocal(1.0 + jnp.exp(-gates), approx=True)
        i_g = s[:, 0 * SW:1 * SW]
        f_g = s[:, 1 * SW:2 * SW]
        g_g = 2.0 * s[:, 2 * SW:3 * SW] - 1.0
        o_g = s[:, 3 * SW:4 * SW]
        c_new = f_g * c + i_g * g_g
        h_new = (o_g * jnp.tanh(c_new)).astype(jnp.bfloat16)
        # packed-sequence semantics: freeze state on padded steps.
        if ndir == 2:
            thresh = jnp.where(colh < H, t, T - 1 - t)   # fwd cols | bwd cols
        else:
            thresh = jnp.where(is_fwd, t, T - 1 - t)
        keep = lens_sw > thresh
        h = jnp.where(keep, h_new, h)
        c = jnp.where(keep, c_new, c)

    out_ref[...] = h.astype(jnp.float32)


def _pack_weights(params, ndir):
    """PyTorch-layout per-direction LSTM weights (gate order i,f,g,o) ->
    MXU-ready packed matrices, one group per kernel program.

    ndir == 2 (fused, 1 group):  gate-major columns
        [i_f i_b | f_f f_b | g_f g_b | o_f o_b], W_hh block-diagonal over the
        two directions; the embedding table is pre-multiplied into W_ih so the
        kernel's one-hot matmul does lookup + projection in one MXU pass.
    ndir == 1 (split, 2 groups): standard per-direction [i|f|g|o] packing.
    g-gate columns are pre-scaled by 2 (tanh(z) = 2*sigmoid(2z) - 1 trick).

    Returns ew (ngroups, ndir*NC, 4*ndir*H) bf16,
            whh (ngroups, ndir*H, 4*ndir*H) bf16,
            bias (ngroups, 1, 4*ndir*H) f32.
    """
    E = params["embedding"].astype(jnp.float32)
    NC = E.shape[0]
    H = params["whh_f"].shape[0]
    dirs = [(params["wih_f"], params["whh_f"], params["b_f"]),
            (params["wih_b"], params["whh_b"], params["b_b"])]
    groups = [[0, 1]] if ndir == 2 else [[0], [1]]
    ew_g, whh_g, b_g = [], [], []
    for dlist in groups:
        nd = len(dlist)
        ew = jnp.zeros((nd * NC, 4 * nd * H), jnp.float32)
        whh = jnp.zeros((nd * H, 4 * nd * H), jnp.float32)
        b = jnp.zeros((1, 4 * nd * H), jnp.float32)
        for gate in range(4):                        # PyTorch gate order i,f,g,o
            sc = 2.0 if gate == 2 else 1.0
            gs = slice(gate * H, (gate + 1) * H)
            for k, d in enumerate(dlist):
                wih_d, whh_d, b_d = dirs[d]
                cs = slice((gate * nd + k) * H, (gate * nd + k + 1) * H)
                ew = ew.at[k * NC:(k + 1) * NC, cs].set(E @ (wih_d[:, gs] * sc))
                whh = whh.at[k * H:(k + 1) * H, cs].set(whh_d[:, gs] * sc)
                b = b.at[:, cs].set(b_d[:, gs] * sc)
        ew_g.append(ew)
        whh_g.append(whh)
        b_g.append(b)
    return (jnp.stack(ew_g).astype(jnp.bfloat16),
            jnp.stack(whh_g).astype(jnp.bfloat16),
            jnp.stack(b_g))


def _dirs_per_program():
    """2 = fuse fwd/bwd in one program (best on 1-TensorCore v5e/v6e);
       1 = one direction per program so a 'parallel' direction grid axis is
           sharded across v7x's two TensorCores."""
    try:
        kind = jax.devices()[0].device_kind.lower()
    except Exception:
        return 2
    return 1 if ("v7" in kind or "7x" in kind) else 2


def char_lstm_forward(chars, params):
    return _char_lstm_forward(chars, params, _dirs_per_program())


@functools.partial(jax.jit, static_argnums=(2,))
def _char_lstm_forward(chars, params, ndir):
    B, T = chars.shape
    H = params["whh_f"].shape[0]
    NC = params["embedding"].shape[0]

    # ---- Batch tiling: "parallel" grid axis; tiles of up to 256 rows
    #      (multiple of 8).  At B=8 this is a single 8-row tile.
    num_tiles = pl.cdiv(B, _MAX_TILE_B)
    Bt = _round_up(pl.cdiv(B, num_tiles), 8)
    B_pad = num_tiles * Bt

    chars = chars.astype(jnp.int32)
    if B_pad != B:
        chars = jnp.pad(chars, ((0, B_pad - B), (0, 0)))     # pad rows -> len 0
    lens = jnp.sum((chars > 0).astype(jnp.int32), axis=1)    # (B_pad,)

    # Tiny int-only index plumbing (the heavy glue — embedding gather,
    # activation concat, mask broadcast — now lives inside the kernel):
    # per-tile, time-major char ids in forward and reversed time order.
    ct = chars.reshape(num_tiles, Bt, T)
    ids_f = jnp.transpose(ct, (0, 2, 1)).reshape(num_tiles * T * Bt, 1)
    ids_b = jnp.transpose(ct[:, :, ::-1], (0, 2, 1)).reshape(num_tiles * T * Bt, 1)
    ids = jnp.stack([ids_f, ids_b], axis=0)                  # (2, R, 1) int32
    lens_col = lens.reshape(num_tiles * Bt, 1)

    ew, whh, bias = _pack_weights(params, ndir)
    SW = ndir * H
    G = 4 * SW
    ngroups = 2 // ndir

    if ndir == 2:
        grid = (num_tiles,)
        dim_sem = ("parallel",)
        ids_spec = pl.BlockSpec((2, T * Bt, 1), lambda j: (0, j, 0))
        lens_spec = pl.BlockSpec((Bt, 1), lambda j: (j, 0))
        ew_spec = pl.BlockSpec((None, 2 * NC, G), lambda j: (0, 0, 0))
        whh_spec = pl.BlockSpec((None, SW, G), lambda j: (0, 0, 0))
        b_spec = pl.BlockSpec((None, 1, G), lambda j: (0, 0, 0))
        out_spec = pl.BlockSpec((None, Bt, SW), lambda j: (0, j, 0))
    else:
        grid = (num_tiles, 2)                                # axis 1 = direction
        dim_sem = ("parallel", "parallel")
        ids_spec = pl.BlockSpec((1, T * Bt, 1), lambda j, d: (d, j, 0))
        lens_spec = pl.BlockSpec((Bt, 1), lambda j, d: (j, 0))
        ew_spec = pl.BlockSpec((None, NC, G), lambda j, d: (d, 0, 0))
        whh_spec = pl.BlockSpec((None, SW, G), lambda j, d: (d, 0, 0))
        b_spec = pl.BlockSpec((None, 1, G), lambda j, d: (d, 0, 0))
        out_spec = pl.BlockSpec((None, Bt, SW), lambda j, d: (d, j, 0))

    out = pl.pallas_call(
        functools.partial(bilstm_kernel, T=T, H=H, n_char=NC, ndir=ndir),
        out_shape=jax.ShapeDtypeStruct((ngroups, B_pad, SW), jnp.float32),
        grid=grid,
        in_specs=[ids_spec, lens_spec, ew_spec, whh_spec, b_spec],
        out_specs=out_spec,
        scratch_shapes=[pltpu.VMEM((T * Bt, G), jnp.float32)],
        compiler_params=pltpu.CompilerParams(dimension_semantics=dim_sem),
    )(ids, lens_col, ew, whh, bias)

    if ndir == 2:
        hidden = out[0]                                      # [h_fwd | h_bwd]
    else:
        hidden = jnp.concatenate([out[0], out[1]], axis=1)   # fwd then bwd
    return hidden[:B]


def init_params(key, n_char, char_dim, char_hidden):
    """Deterministic synthetic init mirroring the module's parameter shapes."""
    H = char_hidden // 2
    ks = jax.random.split(key, 9)
    emb_bound = (3.0 / char_dim) ** 0.5            # reset_parameters()
    k = 1.0 / (H ** 0.5)                           # PyTorch LSTM default init

    def u(kk, shape, bound):
        return jax.random.uniform(kk, shape, jnp.float32, -bound, bound)

    return dict(
        embedding=u(ks[0], (n_char, char_dim), emb_bound),
        wih_f=u(ks[1], (char_dim, 4 * H), k),
        whh_f=u(ks[2], (H, 4 * H), k),
        b_f=u(ks[3], (1, 4 * H), k) + u(ks[4], (1, 4 * H), k),
        wih_b=u(ks[5], (char_dim, 4 * H), k),
        whh_b=u(ks[6], (H, 4 * H), k),
        b_b=u(ks[7], (1, 4 * H), k) + u(ks[8], (1, 4 * H), k),
    )


def char_lstm_reference(chars, params):
    """Pure-JAX f32 reference of the same semantics (for correctness check)."""
    B, T = chars.shape
    H = params["whh_f"].shape[0]
    emb = jnp.take(params["embedding"], chars, axis=0).astype(jnp.float32)
    lens = jnp.sum((chars > 0).astype(jnp.int32), axis=1)
    mask = (jnp.arange(T)[None, :] < lens[:, None]).astype(jnp.float32)

    def run(reverse, wih, whh, b):
        h = jnp.zeros((B, H), jnp.float32)
        c = jnp.zeros((B, H), jnp.float32)
        order = range(T - 1, -1, -1) if reverse else range(T)
        for t in order:
            x_t = emb[:, t, :]
            m_t = mask[:, t][:, None]
            gates = x_t @ wih + h @ whh + b
            i = _sigmoid(gates[:, :H])
            f = _sigmoid(gates[:, H:2 * H])
            g = jnp.tanh(gates[:, 2 * H:3 * H])
            o = _sigmoid(gates[:, 3 * H:])
            c_new = f * c + i * g
            h_new = o * jnp.tanh(c_new)
            h = m_t * h_new + (1.0 - m_t) * h
            c = m_t * c_new + (1.0 - m_t) * c
        return h

    hf = run(False, params["wih_f"], params["whh_f"], params["b_f"])
    hb = run(True, params["wih_b"], params["whh_b"], params["b_b"])
    return jnp.concatenate([hf, hb], axis=1)


if __name__ == "__main__":
    key = jax.random.PRNGKey(0)
    n_char, char_dim, char_hidden = 32, 16, 64     # H = 32 per direction
    B, T = 8, 16

    k_params, k_chars = jax.random.split(key)
    params = init_params(k_params, n_char, char_dim, char_hidden)

    # Deterministic variable-length char ids with trailing zero padding.
    lens = jnp.array([16, 3, 8, 1, 12, 5, 16, 7], dtype=jnp.int32)
    ids = jax.random.randint(k_chars, (B, T), 1, n_char, dtype=jnp.int32)
    valid = jnp.arange(T)[None, :] < lens[:, None]
    chars = jnp.where(valid, ids, 0)

    ref = char_lstm_reference(chars, params)

    # Looser tolerance vs the pure-f32 reference: bf16 matmul operands + bf16
    # h state, approximate EUP reciprocal, and tanh(z) = 2*sigmoid(2z) - 1.
    # Validate BOTH kernel variants (direction-fused and direction-split).
    for nd in (2, 1):
        out = jax.block_until_ready(_char_lstm_forward(chars, params, nd))
        np.testing.assert_allclose(np.asarray(out), np.asarray(ref),
                                   rtol=2e-2, atol=2e-2)

    # Device-dispatched default path (fused on v5e/v6e, split on v7x).
    out = jax.block_until_ready(char_lstm_forward(chars, params))
    np.testing.assert_allclose(np.asarray(out), np.asarray(ref),
                               rtol=2e-2, atol=2e-2)
    print("KERNEL_OK")
</pallas_src>

<mosaic_0001>
module attributes {stable_mosaic.version = 11 : i64} {
  func.func @bilstm_kernel(%arg0: i32, %arg1: memref<2x128x1xi32, #tpu.memory_space<vmem>>, %arg2: memref<8x1xi32, #tpu.memory_space<vmem>>, %arg3: memref<1x64x256xbf16, #tpu.memory_space<vmem>>, %arg4: memref<1x64x256xbf16, #tpu.memory_space<vmem>>, %arg5: memref<1x1x256xf32, #tpu.memory_space<vmem>>, %arg6: memref<1x8x64xf32, #tpu.memory_space<vmem>>, %arg7: memref<128x256xf32, #tpu.memory_space<vmem>>) attributes {dimension_semantics = [#tpu.dimension_semantics<parallel>], iteration_bounds = array<i64: 1>, scalar_prefetch = 0 : i64, scratch_operands = 1 : i64, tpu.core_type = #tpu.core_type<tc>, window_params = [{transform_indices = @transform_0, window_bounds = array<i64: 2, 128, 1>}, {transform_indices = @transform_1, window_bounds = array<i64: 8, 1>}, {pipeline_mode = #tpu.pipeline_mode<synchronous>, transform_indices = @transform_2, window_bounds = array<i64: 1, 64, 256>}, {pipeline_mode = #tpu.pipeline_mode<synchronous>, transform_indices = @transform_3, window_bounds = array<i64: 1, 64, 256>}, {pipeline_mode = #tpu.pipeline_mode<synchronous>, transform_indices = @transform_4, window_bounds = array<i64: 1, 1, 256>}, {transform_indices = @transform_5, window_bounds = array<i64: 1, 8, 64>}]} {
    %0 = tpu.iota {dimensions = array<i32: 1>} : vector<128x64xi32>
    %c0 = arith.constant 0 : index
    %c0_0 = arith.constant 0 : index
    %c0_1 = arith.constant 0 : index
    %1 = vector.load %arg1[%c0, %c0_0, %c0_1] : memref<2x128x1xi32, #tpu.memory_space<vmem>>, vector<1x128x1xi32>
    %2 = vector.shape_cast %1 : vector<1x128x1xi32> to vector<128x1xi32>
    %3 = vector.broadcast %2 : vector<128x1xi32> to vector<128x64xi32>
    %4 = arith.cmpi eq, %0, %3 : vector<128x64xi32>
    %c1 = arith.constant 1 : index
    %c0_2 = arith.constant 0 : index
    %c0_3 = arith.constant 0 : index
    %5 = vector.load %arg1[%c1, %c0_2, %c0_3] : memref<2x128x1xi32, #tpu.memory_space<vmem>>, vector<1x128x1xi32>
    %6 = vector.shape_cast %5 : vector<1x128x1xi32> to vector<128x1xi32>
    %c32_i32 = arith.constant 32 : i32
    %7 = vector.broadcast %c32_i32 : i32 to vector<128x1xi32>
    %8 = arith.addi %6, %7 : vector<128x1xi32>
    %9 = vector.broadcast %8 : vector<128x1xi32> to vector<128x64xi32>
    %10 = arith.cmpi eq, %0, %9 : vector<128x64xi32>
    %11 = arith.ori %4, %10 : vector<128x64xi1>
    %12 = arith.extui %11 : vector<128x64xi1> to vector<128x64xi32>
    %13 = arith.sitofp %12 : vector<128x64xi32> to vector<128x64xf32>
    %14 = arith.truncf %13 : vector<128x64xf32> to vector<128x64xbf16>
    %c0_4 = arith.constant 0 : index
    %c0_5 = arith.constant 0 : index
    %c0_6 = arith.constant 0 : index
    %15 = vector.load %arg3[%c0_4, %c0_5, %c0_6] : memref<1x64x256xbf16, #tpu.memory_space<vmem>>, vector<1x64x256xbf16>
    %16 = vector.shape_cast %15 : vector<1x64x256xbf16> to vector<64x256xbf16>
    %cst = arith.constant dense<0.000000e+00> : vector<128x256xf32>
    %17 = tpu.matmul %14, %16, %cst {dimension_numbers = #tpu.dot_dimension_numbers<[1], [0], [0], [1], [0, 0, 1, 1], [], []>} : vector<128x64xbf16>, vector<64x256xbf16>, vector<128x256xf32> -> vector<128x256xf32>
    %c0_7 = arith.constant 0 : index
    %c0_8 = arith.constant 0 : index
    %c0_9 = arith.constant 0 : index
    %18 = vector.load %arg5[%c0_7, %c0_8, %c0_9] : memref<1x1x256xf32, #tpu.memory_space<vmem>>, vector<1x1x256xf32>
    %19 = vector.shape_cast %18 : vector<1x1x256xf32> to vector<1x256xf32>
    %20 = vector.broadcast %19 : vector<1x256xf32> to vector<128x256xf32>
    %21 = arith.addf %17, %20 : vector<128x256xf32>
    %c0_10 = arith.constant 0 : index
    %c0_11 = arith.constant 0 : index
    %22 = vector.load %arg7[%c0_10, %c0_11] : memref<128x256xf32, #tpu.memory_space<vmem>>, vector<128x256xf32>
    tpu.vector_store %arg7[%c0_10, %c0_11], %21 {strides = array<i32>} : memref<128x256xf32, #tpu.memory_space<vmem>>, vector<128x256xf32>,
    %c0_12 = arith.constant 0 : index
    %c0_13 = arith.constant 0 : index
    %c0_14 = arith.constant 0 : index
    %23 = vector.load %arg4[%c0_12, %c0_13, %c0_14] : memref<1x64x256xbf16, #tpu.memory_space<vmem>>, vector<1x64x256xbf16>
    %24 = vector.shape_cast %23 : vector<1x64x256xbf16> to vector<64x256xbf16>
    %c0_15 = arith.constant 0 : index
    %c0_16 = arith.constant 0 : index
    %25 = vector.load %arg2[%c0_15, %c0_16] : memref<8x1xi32, #tpu.memory_space<vmem>>, vector<8x1xi32>
    %26 = vector.shape_cast %25 : vector<8x1xi32> to vector<8x1xi32>
    %27 = vector.broadcast %26 : vector<8x1xi32> to vector<8x64xi32>
    %28 = tpu.iota {dimensions = array<i32: 1>} : vector<8x64xi32>
    %cst_17 = arith.constant 0.000000e+00 : bf16
    %29 = vector.broadcast %cst_17 : bf16 to vector<8x64xbf16>
    %cst_18 = arith.constant 0.000000e+00 : f32
    %30 = vector.broadcast %cst_18 : f32 to vector<8x64xf32>
    %c0_19 = arith.constant 0 : index
    %c0_20 = arith.constant 0 : index
    %31 = vector.load %arg7[%c0_19, %c0_20] : memref<128x256xf32, #tpu.memory_space<vmem>>, vector<8x256xf32>
    %cst_21 = arith.constant dense<0.000000e+00> : vector<8x256xf32>
    %32 = tpu.matmul %29, %24, %cst_21 {dimension_numbers = #tpu.dot_dimension_numbers<[1], [0], [0], [1], [0, 0, 1, 1], [], []>} : vector<8x64xbf16>, vector<64x256xbf16>, vector<8x256xf32> -> vector<8x256xf32>
    %33 = arith.addf %31, %32 : vector<8x256xf32>
    %cst_22 = arith.constant 0.000000e+00 : f32
    %34 = vector.broadcast %cst_22 : f32 to vector<8x256xf32>
    %35 = arith.subf %34, %33 : vector<8x256xf32>
    %36 = math.exp %35 : vector<8x256xf32>
    %cst_23 = arith.constant 1.000000e+00 : f32
    %37 = vector.broadcast %cst_23 : f32 to vector<8x256xf32>
    %38 = arith.addf %37, %36 : vector<8x256xf32>
    %39 = tpu.reciprocal %38 {approx = true} : vector<8x256xf32> -> vector<8x256xf32>
    %40 = vector.extract_strided_slice %39 {offsets = [0, 0], sizes = [8, 64], strides = [1, 1]} : vector<8x256xf32> to vector<8x64xf32>
    %41 = vector.extract_strided_slice %39 {offsets = [0, 64], sizes = [8, 64], strides = [1, 1]} : vector<8x256xf32> to vector<8x64xf32>
    %42 = vector.extract_strided_slice %39 {offsets = [0, 128], sizes = [8, 64], strides = [1, 1]} : vector<8x256xf32> to vector<8x64xf32>
    %cst_24 = arith.constant 2.000000e+00 : f32
    %43 = vector.broadcast %cst_24 : f32 to vector<8x64xf32>
    %44 = arith.mulf %43, %42 : vector<8x64xf32>
    %cst_25 = arith.constant 1.000000e+00 : f32
    %45 = vector.broadcast %cst_25 : f32 to vector<8x64xf32>
    %46 = arith.subf %44, %45 : vector<8x64xf32>
    %47 = vector.extract_strided_slice %39 {offsets = [0, 192], sizes = [8, 64], strides = [1, 1]} : vector<8x256xf32> to vector<8x64xf32>
    %48 = arith.mulf %41, %30 : vector<8x64xf32>
    %49 = arith.mulf %40, %46 : vector<8x64xf32>
    %50 = arith.addf %48, %49 : vector<8x64xf32>
    %51 = math.tanh %50 : vector<8x64xf32>
    %52 = arith.mulf %47, %51 : vector<8x64xf32>
    %53 = arith.truncf %52 : vector<8x64xf32> to vector<8x64xbf16>
    %c32_i32_26 = arith.constant 32 : i32
    %54 = vector.broadcast %c32_i32_26 : i32 to vector<8x64xi32>
    %55 = arith.cmpi slt, %28, %54 : vector<8x64xi32>
    %c0_i32 = arith.constant 0 : i32
    %c15_i32 = arith.constant 15 : i32
    %56 = vector.broadcast %c0_i32 : i32 to vector<8x64xi32>
    %57 = vector.broadcast %c15_i32 : i32 to vector<8x64xi32>
    %58 = arith.select %55, %56, %57 : vector<8x64xi1>, vector<8x64xi32>
    %59 = arith.cmpi sgt, %27, %58 : vector<8x64xi32>
    %60 = arith.select %59, %53, %29 : vector<8x64xi1>, vector<8x64xbf16>
    %61 = arith.select %59, %50, %30 : vector<8x64xi1>, vector<8x64xf32>
    %c8 = arith.constant 8 : index
    %c0_27 = arith.constant 0 : index
    %62 = vector.load %arg7[%c8, %c0_27] : memref<128x256xf32, #tpu.memory_space<vmem>>, vector<8x256xf32>
    %cst_28 = arith.constant dense<0.000000e+00> : vector<8x256xf32>
    %63 = tpu.matmul %60, %24, %cst_28 {dimension_numbers = #tpu.dot_dimension_numbers<[1], [0], [0], [1], [0, 0, 1, 1], [], []>} : vector<8x64xbf16>, vector<64x256xbf16>, vector<8x256xf32> -> vector<8x256xf32>
    %64 = arith.addf %62, %63 : vector<8x256xf32>
    %cst_29 = arith.constant 0.000000e+00 : f32
    %65 = vector.broadcast %cst_29 : f32 to vector<8x256xf32>
    %66 = arith.subf %65, %64 : vector<8x256xf32>
    %67 = math.exp %66 : vector<8x256xf32>
    %cst_30 = arith.constant 1.000000e+00 : f32
    %68 = vector.broadcast %cst_30 : f32 to vector<8x256xf32>
    %69 = arith.addf %68, %67 : vector<8x256xf32>
    %70 = tpu.reciprocal %69 {approx = true} : vector<8x256xf32> -> vector<8x256xf32>
    %71 = vector.extract_strided_slice %70 {offsets = [0, 0], sizes = [8, 64], strides = [1, 1]} : vector<8x256xf32> to vector<8x64xf32>
    %72 = vector.extract_strided_slice %70 {offsets = [0, 64], sizes = [8, 64], strides = [1, 1]} : vector<8x256xf32> to vector<8x64xf32>
    %73 = vector.extract_strided_slice %70 {offsets = [0, 128], sizes = [8, 64], strides = [1, 1]} : vector<8x256xf32> to vector<8x64xf32>
    %cst_31 = arith.constant 2.000000e+00 : f32
    %74 = vector.broadcast %cst_31 : f32 to vector<8x64xf32>
    %75 = arith.mulf %74, %73 : vector<8x64xf32>
    %cst_32 = arith.constant 1.000000e+00 : f32
    %76 = vector.broadcast %cst_32 : f32 to vector<8x64xf32>
    %77 = arith.subf %75, %76 : vector<8x64xf32>
    %78 = vector.extract_strided_slice %70 {offsets = [0, 192], sizes = [8, 64], strides = [1, 1]} : vector<8x256xf32> to vector<8x64xf32>
    %79 = arith.mulf %72, %61 : vector<8x64xf32>
    %80 = arith.mulf %71, %77 : vector<8x64xf32>
    %81 = arith.addf %79, %80 : vector<8x64xf32>
    %82 = math.tanh %81 : vector<8x64xf32>
    %83 = arith.mulf %78, %82 : vector<8x64xf32>
    %84 = arith.truncf %83 : vector<8x64xf32> to vector<8x64xbf16>
    %c32_i32_33 = arith.constant 32 : i32
    %85 = vector.broadcast %c32_i32_33 : i32 to vector<8x64xi32>
    %86 = arith.cmpi slt, %28, %85 : vector<8x64xi32>
    %c1_i32 = arith.constant 1 : i32
    %c14_i32 = arith.constant 14 : i32
    %87 = vector.broadcast %c1_i32 : i32 to vector<8x64xi32>
    %88 = vector.broadcast %c14_i32 : i32 to vector<8x64xi32>
    %89 = arith.select %86, %87, %88 : vector<8x64xi1>, vector<8x64xi32>
    %90 = arith.cmpi sgt, %27, %89 : vector<8x64xi32>
    %91 = arith.select %90, %84, %60 : vector<8x64xi1>, vector<8x64xbf16>
    %92 = arith.select %90, %81, %61 : vector<8x64xi1>, vector<8x64xf32>
    %c16 = arith.constant 16 : index
    %c0_34 = arith.constant 0 : index
    %93 = vector.load %arg7[%c16, %c0_34] : memref<128x256xf32, #tpu.memory_space<vmem>>, vector<8x256xf32>
    %cst_35 = arith.constant dense<0.000000e+00> : vector<8x256xf32>
    %94 = tpu.matmul %91, %24, %cst_35 {dimension_numbers = #tpu.dot_dimension_numbers<[1], [0], [0], [1], [0, 0, 1, 1], [], []>} : vector<8x64xbf16>, vector<64x256xbf16>, vector<8x256xf32> -> vector<8x256xf32>
    %95 = arith.addf %93, %94 : vector<8x256xf32>
    %cst_36 = arith.constant 0.000000e+00 : f32
    %96 = vector.broadcast %cst_36 : f32 to vector<8x256xf32>
    %97 = arith.subf %96, %95 : vector<8x256xf32>
    %98 = math.exp %97 : vector<8x256xf32>
    %cst_37 = arith.constant 1.000000e+00 : f32
    %99 = vector.broadcast %cst_37 : f32 to vector<8x256xf32>
    %100 = arith.addf %99, %98 : vector<8x256xf32>
    %101 = tpu.reciprocal %100 {approx = true} : vector<8x256xf32> -> vector<8x256xf32>
    %102 = vector.extract_strided_slice %101 {offsets = [0, 0], sizes = [8, 64], strides = [1, 1]} : vector<8x256xf32> to vector<8x64xf32>
    %103 = vector.extract_strided_slice %101 {offsets = [0, 64], sizes = [8, 64], strides = [1, 1]} : vector<8x256xf32> to vector<8x64xf32>
    %104 = vector.extract_strided_slice %101 {offsets = [0, 128], sizes = [8, 64], strides = [1, 1]} : vector<8x256xf32> to vector<8x64xf32>
    %cst_38 = arith.constant 2.000000e+00 : f32
    %105 = vector.broadcast %cst_38 : f32 to vector<8x64xf32>
    %106 = arith.mulf %105, %104 : vector<8x64xf32>
    %cst_39 = arith.constant 1.000000e+00 : f32
    %107 = vector.broadcast %cst_39 : f32 to vector<8x64xf32>
    %108 = arith.subf %106, %107 : vector<8x64xf32>
    %109 = vector.extract_strided_slice %101 {offsets = [0, 192], sizes = [8, 64], strides = [1, 1]} : vector<8x256xf32> to vector<8x64xf32>
    %110 = arith.mulf %103, %92 : vector<8x64xf32>
    %111 = arith.mulf %102, %108 : vector<8x64xf32>
    %112 = arith.addf %110, %111 : vector<8x64xf32>
    %113 = math.tanh %112 : vector<8x64xf32>
    %114 = arith.mulf %109, %113 : vector<8x64xf32>
    %115 = arith.truncf %114 : vector<8x64xf32> to vector<8x64xbf16>
    %c32_i32_40 = arith.constant 32 : i32
    %116 = vector.broadcast %c32_i32_40 : i32 to vector<8x64xi32>
    %117 = arith.cmpi slt, %28, %116 : vector<8x64xi32>
    %c2_i32 = arith.constant 2 : i32
    %c13_i32 = arith.constant 13 : i32
    %118 = vector.broadcast %c2_i32 : i32 to vector<8x64xi32>
    %119 = vector.broadcast %c13_i32 : i32 to vector<8x64xi32>
    %120 = arith.select %117, %118, %119 : vector<8x64xi1>, vector<8x64xi32>
    %121 = arith.cmpi sgt, %27, %120 : vector<8x64xi32>
    %122 = arith.select %121, %115, %91 : vector<8x64xi1>, vector<8x64xbf16>
    %123 = arith.select %121, %112, %92 : vector<8x64xi1>, vector<8x64xf32>
    %c24 = arith.constant 24 : index
    %c0_41 = arith.constant 0 : index
    %124 = vector.load %arg7[%c24, %c0_41] : memref<128x256xf32, #tpu.memory_space<vmem>>, vector<8x256xf32>
    %cst_42 = arith.constant dense<0.000000e+00> : vector<8x256xf32>
    %125 = tpu.matmul %122, %24, %cst_42 {dimension_numbers = #tpu.dot_dimension_numbers<[1], [0], [0], [1], [0, 0, 1, 1], [], []>} : vector<8x64xbf16>, vector<64x256xbf16>, vector<8x256xf32> -> vector<8x256xf32>
    %126 = arith.addf %124, %125 : vector<8x256xf32>
    %cst_43 = arith.constant 0.000000e+00 : f32
    %127 = vector.broadcast %cst_43 : f32 to vector<8x256xf32>
    %128 = arith.subf %127, %126 : vector<8x256xf32>
    %129 = math.exp %128 : vector<8x256xf32>
    %cst_44 = arith.constant 1.000000e+00 : f32
    %130 = vector.broadcast %cst_44 : f32 to vector<8x256xf32>
    %131 = arith.addf %130, %129 : vector<8x256xf32>
    %132 = tpu.reciprocal %131 {approx = true} : vector<8x256xf32> -> vector<8x256xf32>
    %133 = vector.extract_strided_slice %132 {offsets = [0, 0], sizes = [8, 64], strides = [1, 1]} : vector<8x256xf32> to vector<8x64xf32>
    %134 = vector.extract_strided_slice %132 {offsets = [0, 64], sizes = [8, 64], strides = [1, 1]} : vector<8x256xf32> to vector<8x64xf32>
    %135 = vector.extract_strided_slice %132 {offsets = [0, 128], sizes = [8, 64], strides = [1, 1]} : vector<8x256xf32> to vector<8x64xf32>
    %cst_45 = arith.constant 2.000000e+00 : f32
    %136 = vector.broadcast %cst_45 : f32 to vector<8x64xf32>
    %137 = arith.mulf %136, %135 : vector<8x64xf32>
    %cst_46 = arith.constant 1.000000e+00 : f32
    %138 = vector.broadcast %cst_46 : f32 to vector<8x64xf32>
    %139 = arith.subf %137, %138 : vector<8x64xf32>
    %140 = vector.extract_strided_slice %132 {offsets = [0, 192], sizes = [8, 64], strides = [1, 1]} : vector<8x256xf32> to vector<8x64xf32>
    %141 = arith.mulf %134, %123 : vector<8x64xf32>
    %142 = arith.mulf %133, %139 : vector<8x64xf32>
    %143 = arith.addf %141, %142 : vector<8x64xf32>
    %144 = math.tanh %143 : vector<8x64xf32>
    %145 = arith.mulf %140, %144 : vector<8x64xf32>
    %146 = arith.truncf %145 : vector<8x64xf32> to vector<8x64xbf16>
    %c32_i32_47 = arith.constant 32 : i32
    %147 = vector.broadcast %c32_i32_47 : i32 to vector<8x64xi32>
    %148 = arith.cmpi slt, %28, %147 : vector<8x64xi32>
    %c3_i32 = arith.constant 3 : i32
    %c12_i32 = arith.constant 12 : i32
    %149 = vector.broadcast %c3_i32 : i32 to vector<8x64xi32>
    %150 = vector.broadcast %c12_i32 : i32 to vector<8x64xi32>
    %151 = arith.select %148, %149, %150 : vector<8x64xi1>, vector<8x64xi32>
    %152 = arith.cmpi sgt, %27, %151 : vector<8x64xi32>
    %153 = arith.select %152, %146, %122 : vector<8x64xi1>, vector<8x64xbf16>
    %154 = arith.select %152, %143, %123 : vector<8x64xi1>, vector<8x64xf32>
    %c32 = arith.constant 32 : index
    %c0_48 = arith.constant 0 : index
    %155 = vector.load %arg7[%c32, %c0_48] : memref<128x256xf32, #tpu.memory_space<vmem>>, vector<8x256xf32>
    %cst_49 = arith.constant dense<0.000000e+00> : vector<8x256xf32>
    %156 = tpu.matmul %153, %24, %cst_49 {dimension_numbers = #tpu.dot_dimension_numbers<[1], [0], [0], [1], [0, 0, 1, 1], [], []>} : vector<8x64xbf16>, vector<64x256xbf16>, vector<8x256xf32> -> vector<8x256xf32>
    %157 = arith.addf %155, %156 : vector<8x256xf32>
    %cst_50 = arith.constant 0.000000e+00 : f32
    %158 = vector.broadcast %cst_50 : f32 to vector<8x256xf32>
    %159 = arith.subf %158, %157 : vector<8x256xf32>
    %160 = math.exp %159 : vector<8x256xf32>
    %cst_51 = arith.constant 1.000000e+00 : f32
    %161 = vector.broadcast %cst_51 : f32 to vector<8x256xf32>
    %162 = arith.addf %161, %160 : vector<8x256xf32>
    %163 = tpu.reciprocal %162 {approx = true} : vector<8x256xf32> -> vector<8x256xf32>
    %164 = vector.extract_strided_slice %163 {offsets = [0, 0], sizes = [8, 64], strides = [1, 1]} : vector<8x256xf32> to vector<8x64xf32>
    %165 = vector.extract_strided_slice %163 {offsets = [0, 64], sizes = [8, 64], strides = [1, 1]} : vector<8x256xf32> to vector<8x64xf32>
    %166 = vector.extract_strided_slice %163 {offsets = [0, 128], sizes = [8, 64], strides = [1, 1]} : vector<8x256xf32> to vector<8x64xf32>
    %cst_52 = arith.constant 2.000000e+00 : f32
    %167 = vector.broadcast %cst_52 : f32 to vector<8x64xf32>
    %168 = arith.mulf %167, %166 : vector<8x64xf32>
    %cst_53 = arith.constant 1.000000e+00 : f32
    %169 = vector.broadcast %cst_53 : f32 to vector<8x64xf32>
    %170 = arith.subf %168, %169 : vector<8x64xf32>
    %171 = vector.extract_strided_slice %163 {offsets = [0, 192], sizes = [8, 64], strides = [1, 1]} : vector<8x256xf32> to vector<8x64xf32>
    %172 = arith.mulf %165, %154 : vector<8x64xf32>
    %173 = arith.mulf %164, %170 : vector<8x64xf32>
    %174 = arith.addf %172, %173 : vector<8x64xf32>
    %175 = math.tanh %174 : vector<8x64xf32>
    %176 = arith.mulf %171, %175 : vector<8x64xf32>
    %177 = arith.truncf %176 : vector<8x64xf32> to vector<8x64xbf16>
    %c32_i32_54 = arith.constant 32 : i32
    %178 = vector.broadcast %c32_i32_54 : i32 to vector<8x64xi32>
    %179 = arith.cmpi slt, %28, %178 : vector<8x64xi32>
    %c4_i32 = arith.constant 4 : i32
    %c11_i32 = arith.constant 11 : i32
    %180 = vector.broadcast %c4_i32 : i32 to vector<8x64xi32>
    %181 = vector.broadcast %c11_i32 : i32 to vector<8x64xi32>
    %182 = arith.select %179, %180, %181 : vector<8x64xi1>, vector<8x64xi32>
    %183 = arith.cmpi sgt, %27, %182 : vector<8x64xi32>
    %184 = arith.select %183, %177, %153 : vector<8x64xi1>, vector<8x64xbf16>
    %185 = arith.select %183, %174, %154 : vector<8x64xi1>, vector<8x64xf32>
    %c40 = arith.constant 40 : index
    %c0_55 = arith.constant 0 : index
    %186 = vector.load %arg7[%c40, %c0_55] : memref<128x256xf32, #tpu.memory_space<vmem>>, vector<8x256xf32>
    %cst_56 = arith.constant dense<0.000000e+00> : vector<8x256xf32>
    %187 = tpu.matmul %184, %24, %cst_56 {dimension_numbers = #tpu.dot_dimension_numbers<[1], [0], [0], [1], [0, 0, 1, 1], [], []>} : vector<8x64xbf16>, vector<64x256xbf16>, vector<8x256xf32> -> vector<8x256xf32>
    %188 = arith.addf %186, %187 : vector<8x256xf32>
    %cst_57 = arith.constant 0.000000e+00 : f32
    %189 = vector.broadcast %cst_57 : f32 to vector<8x256xf32>
    %190 = arith.subf %189, %188 : vector<8x256xf32>
    %191 = math.exp %190 : vector<8x256xf32>
    %cst_58 = arith.constant 1.000000e+00 : f32
    %192 = vector.broadcast %cst_58 : f32 to vector<8x256xf32>
    %193 = arith.addf %192, %191 : vector<8x256xf32>
    %194 = tpu.reciprocal %193 {approx = true} : vector<8x256xf32> -> vector<8x256xf32>
    %195 = vector.extract_strided_slice %194 {offsets = [0, 0], sizes = [8, 64], strides = [1, 1]} : vector<8x256xf32> to vector<8x64xf32>
    %196 = vector.extract_strided_slice %194 {offsets = [0, 64], sizes = [8, 64], strides = [1, 1]} : vector<8x256xf32> to vector<8x64xf32>
    %197 = vector.extract_strided_slice %194 {offsets = [0, 128], sizes = [8, 64], strides = [1, 1]} : vector<8x256xf32> to vector<8x64xf32>
    %cst_59 = arith.constant 2.000000e+00 : f32
    %198 = vector.broadcast %cst_59 : f32 to vector<8x64xf32>
    %199 = arith.mulf %198, %197 : vector<8x64xf32>
    %cst_60 = arith.constant 1.000000e+00 : f32
    %200 = vector.broadcast %cst_60 : f32 to vector<8x64xf32>
    %201 = arith.subf %199, %200 : vector<8x64xf32>
    %202 = vector.extract_strided_slice %194 {offsets = [0, 192], sizes = [8, 64], strides = [1, 1]} : vector<8x256xf32> to vector<8x64xf32>
    %203 = arith.mulf %196, %185 : vector<8x64xf32>
    %204 = arith.mulf %195, %201 : vector<8x64xf32>
    %205 = arith.addf %203, %204 : vector<8x64xf32>
    %206 = math.tanh %205 : vector<8x64xf32>
    %207 = arith.mulf %202, %206 : vector<8x64xf32>
    %208 = arith.truncf %207 : vector<8x64xf32> to vector<8x64xbf16>
    %c32_i32_61 = arith.constant 32 : i32
    %209 = vector.broadcast %c32_i32_61 : i32 to vector<8x64xi32>
    %210 = arith.cmpi slt, %28, %209 : vector<8x64xi32>
    %c5_i32 = arith.constant 5 : i32
    %c10_i32 = arith.constant 10 : i32
    %211 = vector.broadcast %c5_i32 : i32 to vector<8x64xi32>
    %212 = vector.broadcast %c10_i32 : i32 to vector<8x64xi32>
    %213 = arith.select %210, %211, %212 : vector<8x64xi1>, vector<8x64xi32>
    %214 = arith.cmpi sgt, %27, %213 : vector<8x64xi32>
    %215 = arith.select %214, %208, %184 : vector<8x64xi1>, vector<8x64xbf16>
    %216 = arith.select %214, %205, %185 : vector<8x64xi1>, vector<8x64xf32>
    %c48 = arith.constant 48 : index
    %c0_62 = arith.constant 0 : index
    %217 = vector.load %arg7[%c48, %c0_62] : memref<128x256xf32, #tpu.memory_space<vmem>>, vector<8x256xf32>
    %cst_63 = arith.constant dense<0.000000e+00> : vector<8x256xf32>
    %218 = tpu.matmul %215, %24, %cst_63 {dimension_numbers = #tpu.dot_dimension_numbers<[1], [0], [0], [1], [0, 0, 1, 1], [], []>} : vector<8x64xbf16>, vector<64x256xbf16>, vector<8x256xf32> -> vector<8x256xf32>
    %219 = arith.addf %217, %218 : vector<8x256xf32>
    %cst_64 = arith.constant 0.000000e+00 : f32
    %220 = vector.broadcast %cst_64 : f32 to vector<8x256xf32>
    %221 = arith.subf %220, %219 : vector<8x256xf32>
    %222 = math.exp %221 : vector<8x256xf32>
    %cst_65 = arith.constant 1.000000e+00 : f32
    %223 = vector.broadcast %cst_65 : f32 to vector<8x256xf32>
    %224 = arith.addf %223, %222 : vector<8x256xf32>
    %225 = tpu.reciprocal %224 {approx = true} : vector<8x256xf32> -> vector<8x256xf32>
    %226 = vector.extract_strided_slice %225 {offsets = [0, 0], sizes = [8, 64], strides = [1, 1]} : vector<8x256xf32> to vector<8x64xf32>
    %227 = vector.extract_strided_slice %225 {offsets = [0, 64], sizes = [8, 64], strides = [1, 1]} : vector<8x256xf32> to vector<8x64xf32>
    %228 = vector.extract_strided_slice %225 {offsets = [0, 128], sizes = [8, 64], strides = [1, 1]} : vector<8x256xf32> to vector<8x64xf32>
    %cst_66 = arith.constant 2.000000e+00 : f32
    %229 = vector.broadcast %cst_66 : f32 to vector<8x64xf32>
    %230 = arith.mulf %229, %228 : vector<8x64xf32>
    %cst_67 = arith.constant 1.000000e+00 : f32
    %231 = vector.broadcast %cst_67 : f32 to vector<8x64xf32>
    %232 = arith.subf %230, %231 : vector<8x64xf32>
    %233 = vector.extract_strided_slice %225 {offsets = [0, 192], sizes = [8, 64], strides = [1, 1]} : vector<8x256xf32> to vector<8x64xf32>
    %234 = arith.mulf %227, %216 : vector<8x64xf32>
    %235 = arith.mulf %226, %232 : vector<8x64xf32>
    %236 = arith.addf %234, %235 : vector<8x64xf32>
    %237 = math.tanh %236 : vector<8x64xf32>
    %238 = arith.mulf %233, %237 : vector<8x64xf32>
    %239 = arith.truncf %238 : vector<8x64xf32> to vector<8x64xbf16>
    %c32_i32_68 = arith.constant 32 : i32
    %240 = vector.broadcast %c32_i32_68 : i32 to vector<8x64xi32>
    %241 = arith.cmpi slt, %28, %240 : vector<8x64xi32>
    %c6_i32 = arith.constant 6 : i32
    %c9_i32 = arith.constant 9 : i32
    %242 = vector.broadcast %c6_i32 : i32 to vector<8x64xi32>
    %243 = vector.broadcast %c9_i32 : i32 to vector<8x64xi32>
    %244 = arith.select %241, %242, %243 : vector<8x64xi1>, vector<8x64xi32>
    %245 = arith.cmpi sgt, %27, %244 : vector<8x64xi32>
    %246 = arith.select %245, %239, %215 : vector<8x64xi1>, vector<8x64xbf16>
    %247 = arith.select %245, %236, %216 : vector<8x64xi1>, vector<8x64xf32>
    %c56 = arith.constant 56 : index
    %c0_69 = arith.constant 0 : index
    %248 = vector.load %arg7[%c56, %c0_69] : memref<128x256xf32, #tpu.memory_space<vmem>>, vector<8x256xf32>
    %cst_70 = arith.constant dense<0.000000e+00> : vector<8x256xf32>
    %249 = tpu.matmul %246, %24, %cst_70 {dimension_numbers = #tpu.dot_dimension_numbers<[1], [0], [0], [1], [0, 0, 1, 1], [], []>} : vector<8x64xbf16>, vector<64x256xbf16>, vector<8x256xf32> -> vector<8x256xf32>
    %250 = arith.addf %248, %249 : vector<8x256xf32>
    %cst_71 = arith.constant 0.000000e+00 : f32
    %251 = vector.broadcast %cst_71 : f32 to vector<8x256xf32>
    %252 = arith.subf %251, %250 : vector<8x256xf32>
    %253 = math.exp %252 : vector<8x256xf32>
    %cst_72 = arith.constant 1.000000e+00 : f32
    %254 = vector.broadcast %cst_72 : f32 to vector<8x256xf32>
    %255 = arith.addf %254, %253 : vector<8x256xf32>
    %256 = tpu.reciprocal %255 {approx = true} : vector<8x256xf32> -> vector<8x256xf32>
    %257 = vector.extract_strided_slice %256 {offsets = [0, 0], sizes = [8, 64], strides = [1, 1]} : vector<8x256xf32> to vector<8x64xf32>
    %258 = vector.extract_strided_slice %256 {offsets = [0, 64], sizes = [8, 64], strides = [1, 1]} : vector<8x256xf32> to vector<8x64xf32>
    %259 = vector.extract_strided_slice %256 {offsets = [0, 128], sizes = [8, 64], strides = [1, 1]} : vector<8x256xf32> to vector<8x64xf32>
    %cst_73 = arith.constant 2.000000e+00 : f32
    %260 = vector.broadcast %cst_73 : f32 to vector<8x64xf32>
    %261 = arith.mulf %260, %259 : vector<8x64xf32>
    %cst_74 = arith.constant 1.000000e+00 : f32
    %262 = vector.broadcast %cst_74 : f32 to vector<8x64xf32>
    %263 = arith.subf %261, %262 : vector<8x64xf32>
    %264 = vector.extract_strided_slice %256 {offsets = [0, 192], sizes = [8, 64], strides = [1, 1]} : vector<8x256xf32> to vector<8x64xf32>
    %265 = arith.mulf %258, %247 : vector<8x64xf32>
    %266 = arith.mulf %257, %263 : vector<8x64xf32>
    %267 = arith.addf %265, %266 : vector<8x64xf32>
    %268 = math.tanh %267 : vector<8x64xf32>
    %269 = arith.mulf %264, %268 : vector<8x64xf32>
    %270 = arith.truncf %269 : vector<8x64xf32> to vector<8x64xbf16>
    %c32_i32_75 = arith.constant 32 : i32
    %271 = vector.broadcast %c32_i32_75 : i32 to vector<8x64xi32>
    %272 = arith.cmpi slt, %28, %271 : vector<8x64xi32>
    %c7_i32 = arith.constant 7 : i32
    %c8_i32 = arith.constant 8 : i32
    %273 = vector.broadcast %c7_i32 : i32 to vector<8x64xi32>
    %274 = vector.broadcast %c8_i32 : i32 to vector<8x64xi32>
    %275 = arith.select %272, %273, %274 : vector<8x64xi1>, vector<8x64xi32>
    %276 = arith.cmpi sgt, %27, %275 : vector<8x64xi32>
    %277 = arith.select %276, %270, %246 : vector<8x64xi1>, vector<8x64xbf16>
    %278 = arith.select %276, %267, %247 : vector<8x64xi1>, vector<8x64xf32>
    %c64 = arith.constant 64 : index
    %c0_76 = arith.constant 0 : index
    %279 = vector.load %arg7[%c64, %c0_76] : memref<128x256xf32, #tpu.memory_space<vmem>>, vector<8x256xf32>
    %cst_77 = arith.constant dense<0.000000e+00> : vector<8x256xf32>
    %280 = tpu.matmul %277, %24, %cst_77 {dimension_numbers = #tpu.dot_dimension_numbers<[1], [0], [0], [1], [0, 0, 1, 1], [], []>} : vector<8x64xbf16>, vector<64x256xbf16>, vector<8x256xf32> -> vector<8x256xf32>
    %281 = arith.addf %279, %280 : vector<8x256xf32>
    %cst_78 = arith.constant 0.000000e+00 : f32
    %282 = vector.broadcast %cst_78 : f32 to vector<8x256xf32>
    %283 = arith.subf %282, %281 : vector<8x256xf32>
    %284 = math.exp %283 : vector<8x256xf32>
    %cst_79 = arith.constant 1.000000e+00 : f32
    %285 = vector.broadcast %cst_79 : f32 to vector<8x256xf32>
    %286 = arith.addf %285, %284 : vector<8x256xf32>
    %287 = tpu.reciprocal %286 {approx = true} : vector<8x256xf32> -> vector<8x256xf32>
    %288 = vector.extract_strided_slice %287 {offsets = [0, 0], sizes = [8, 64], strides = [1, 1]} : vector<8x256xf32> to vector<8x64xf32>
    %289 = vector.extract_strided_slice %287 {offsets = [0, 64], sizes = [8, 64], strides = [1, 1]} : vector<8x256xf32> to vector<8x64xf32>
    %290 = vector.extract_strided_slice %287 {offsets = [0, 128], sizes = [8, 64], strides = [1, 1]} : vector<8x256xf32> to vector<8x64xf32>
    %cst_80 = arith.constant 2.000000e+00 : f32
    %291 = vector.broadcast %cst_80 : f32 to vector<8x64xf32>
    %292 = arith.mulf %291, %290 : vector<8x64xf32>
    %cst_81 = arith.constant 1.000000e+00 : f32
    %293 = vector.broadcast %cst_81 : f32 to vector<8x64xf32>
    %294 = arith.subf %292, %293 : vector<8x64xf32>
    %295 = vector.extract_strided_slice %287 {offsets = [0, 192], sizes = [8, 64], strides = [1, 1]} : vector<8x256xf32> to vector<8x64xf32>
    %296 = arith.mulf %289, %278 : vector<8x64xf32>
    %297 = arith.mulf %288, %294 : vector<8x64xf32>
    %298 = arith.addf %296, %297 : vector<8x64xf32>
    %299 = math.tanh %298 : vector<8x64xf32>
    %300 = arith.mulf %295, %299 : vector<8x64xf32>
    %301 = arith.truncf %300 : vector<8x64xf32> to vector<8x64xbf16>
    %c32_i32_82 = arith.constant 32 : i32
    %302 = vector.broadcast %c32_i32_82 : i32 to vector<8x64xi32>
    %303 = arith.cmpi slt, %28, %302 : vector<8x64xi32>
    %c8_i32_83 = arith.constant 8 : i32
    %c7_i32_84 = arith.constant 7 : i32
    %304 = vector.broadcast %c8_i32_83 : i32 to vector<8x64xi32>
    %305 = vector.broadcast %c7_i32_84 : i32 to vector<8x64xi32>
    %306 = arith.select %303, %304, %305 : vector<8x64xi1>, vector<8x64xi32>
    %307 = arith.cmpi sgt, %27, %306 : vector<8x64xi32>
    %308 = arith.select %307, %301, %277 : vector<8x64xi1>, vector<8x64xbf16>
    %309 = arith.select %307, %298, %278 : vector<8x64xi1>, vector<8x64xf32>
    %c72 = arith.constant 72 : index
    %c0_85 = arith.constant 0 : index
    %310 = vector.load %arg7[%c72, %c0_85] : memref<128x256xf32, #tpu.memory_space<vmem>>, vector<8x256xf32>
    %cst_86 = arith.constant dense<0.000000e+00> : vector<8x256xf32>
    %311 = tpu.matmul %308, %24, %cst_86 {dimension_numbers = #tpu.dot_dimension_numbers<[1], [0], [0], [1], [0, 0, 1, 1], [], []>} : vector<8x64xbf16>, vector<64x256xbf16>, vector<8x256xf32> -> vector<8x256xf32>
    %312 = arith.addf %310, %311 : vector<8x256xf32>
    %cst_87 = arith.constant 0.000000e+00 : f32
    %313 = vector.broadcast %cst_87 : f32 to vector<8x256xf32>
    %314 = arith.subf %313, %312 : vector<8x256xf32>
    %315 = math.exp %314 : vector<8x256xf32>
    %cst_88 = arith.constant 1.000000e+00 : f32
    %316 = vector.broadcast %cst_88 : f32 to vector<8x256xf32>
    %317 = arith.addf %316, %315 : vector<8x256xf32>
    %318 = tpu.reciprocal %317 {approx = true} : vector<8x256xf32> -> vector<8x256xf32>
    %319 = vector.extract_strided_slice %318 {offsets = [0, 0], sizes = [8, 64], strides = [1, 1]} : vector<8x256xf32> to vector<8x64xf32>
    %320 = vector.extract_strided_slice %318 {offsets = [0, 64], sizes = [8, 64], strides = [1, 1]} : vector<8x256xf32> to vector<8x64xf32>
    %321 = vector.extract_strided_slice %318 {offsets = [0, 128], sizes = [8, 64], strides = [1, 1]} : vector<8x256xf32> to vector<8x64xf32>
    %cst_89 = arith.constant 2.000000e+00 : f32
    %322 = vector.broadcast %cst_89 : f32 to vector<8x64xf32>
    %323 = arith.mulf %322, %321 : vector<8x64xf32>
    %cst_90 = arith.constant 1.000000e+00 : f32
    %324 = vector.broadcast %cst_90 : f32 to vector<8x64xf32>
    %325 = arith.subf %323, %324 : vector<8x64xf32>
    %326 = vector.extract_strided_slice %318 {offsets = [0, 192], sizes = [8, 64], strides = [1, 1]} : vector<8x256xf32> to vector<8x64xf32>
    %327 = arith.mulf %320, %309 : vector<8x64xf32>
    %328 = arith.mulf %319, %325 : vector<8x64xf32>
    %329 = arith.addf %327, %328 : vector<8x64xf32>
    %330 = math.tanh %329 : vector<8x64xf32>
    %331 = arith.mulf %326, %330 : vector<8x64xf32>
    %332 = arith.truncf %331 : vector<8x64xf32> to vector<8x64xbf16>
    %c32_i32_91 = arith.constant 32 : i32
    %333 = vector.broadcast %c32_i32_91 : i32 to vector<8x64xi32>
    %334 = arith.cmpi slt, %28, %333 : vector<8x64xi32>
    %c9_i32_92 = arith.constant 9 : i32
    %c6_i32_93 = arith.constant 6 : i32
    %335 = vector.broadcast %c9_i32_92 : i32 to vector<8x64xi32>
    %336 = vector.broadcast %c6_i32_93 : i32 to vector<8x64xi32>
    %337 = arith.select %334, %335, %336 : vector<8x64xi1>, vector<8x64xi32>
    %338 = arith.cmpi sgt, %27, %337 : vector<8x64xi32>
    %339 = arith.select %338, %332, %308 : vector<8x64xi1>, vector<8x64xbf16>
    %340 = arith.select %338, %329, %309 : vector<8x64xi1>, vector<8x64xf32>
    %c80 = arith.constant 80 : index
    %c0_94 = arith.constant 0 : index
    %341 = vector.load %arg7[%c80, %c0_94] : memref<128x256xf32, #tpu.memory_space<vmem>>, vector<8x256xf32>
    %cst_95 = arith.constant dense<0.000000e+00> : vector<8x256xf32>
    %342 = tpu.matmul %339, %24, %cst_95 {dimension_numbers = #tpu.dot_dimension_numbers<[1], [0], [0], [1], [0, 0, 1, 1], [], []>} : vector<8x64xbf16>, vector<64x256xbf16>, vector<8x256xf32> -> vector<8x256xf32>
    %343 = arith.addf %341, %342 : vector<8x256xf32>
    %cst_96 = arith.constant 0.000000e+00 : f32
    %344 = vector.broadcast %cst_96 : f32 to vector<8x256xf32>
    %345 = arith.subf %344, %343 : vector<8x256xf32>
    %346 = math.exp %345 : vector<8x256xf32>
    %cst_97 = arith.constant 1.000000e+00 : f32
    %347 = vector.broadcast %cst_97 : f32 to vector<8x256xf32>
    %348 = arith.addf %347, %346 : vector<8x256xf32>
    %349 = tpu.reciprocal %348 {approx = true} : vector<8x256xf32> -> vector<8x256xf32>
    %350 = vector.extract_strided_slice %349 {offsets = [0, 0], sizes = [8, 64], strides = [1, 1]} : vector<8x256xf32> to vector<8x64xf32>
    %351 = vector.extract_strided_slice %349 {offsets = [0, 64], sizes = [8, 64], strides = [1, 1]} : vector<8x256xf32> to vector<8x64xf32>
    %352 = vector.extract_strided_slice %349 {offsets = [0, 128], sizes = [8, 64], strides = [1, 1]} : vector<8x256xf32> to vector<8x64xf32>
    %cst_98 = arith.constant 2.000000e+00 : f32
    %353 = vector.broadcast %cst_98 : f32 to vector<8x64xf32>
    %354 = arith.mulf %353, %352 : vector<8x64xf32>
    %cst_99 = arith.constant 1.000000e+00 : f32
    %355 = vector.broadcast %cst_99 : f32 to vector<8x64xf32>
    %356 = arith.subf %354, %355 : vector<8x64xf32>
    %357 = vector.extract_strided_slice %349 {offsets = [0, 192], sizes = [8, 64], strides = [1, 1]} : vector<8x256xf32> to vector<8x64xf32>
    %358 = arith.mulf %351, %340 : vector<8x64xf32>
    %359 = arith.mulf %350, %356 : vector<8x64xf32>
    %360 = arith.addf %358, %359 : vector<8x64xf32>
    %361 = math.tanh %360 : vector<8x64xf32>
    %362 = arith.mulf %357, %361 : vector<8x64xf32>
    %363 = arith.truncf %362 : vector<8x64xf32> to vector<8x64xbf16>
    %c32_i32_100 = arith.constant 32 : i32
    %364 = vector.broadcast %c32_i32_100 : i32 to vector<8x64xi32>
    %365 = arith.cmpi slt, %28, %364 : vector<8x64xi32>
    %c10_i32_101 = arith.constant 10 : i32
    %c5_i32_102 = arith.constant 5 : i32
    %366 = vector.broadcast %c10_i32_101 : i32 to vector<8x64xi32>
    %367 = vector.broadcast %c5_i32_102 : i32 to vector<8x64xi32>
    %368 = arith.select %365, %366, %367 : vector<8x64xi1>, vector<8x64xi32>
    %369 = arith.cmpi sgt, %27, %368 : vector<8x64xi32>
    %370 = arith.select %369, %363, %339 : vector<8x64xi1>, vector<8x64xbf16>
    %371 = arith.select %369, %360, %340 : vector<8x64xi1>, vector<8x64xf32>
    %c88 = arith.constant 88 : index
    %c0_103 = arith.constant 0 : index
    %372 = vector.load %arg7[%c88, %c0_103] : memref<128x256xf32, #tpu.memory_space<vmem>>, vector<8x256xf32>
    %cst_104 = arith.constant dense<0.000000e+00> : vector<8x256xf32>
    %373 = tpu.matmul %370, %24, %cst_104 {dimension_numbers = #tpu.dot_dimension_numbers<[1], [0], [0], [1], [0, 0, 1, 1], [], []>} : vector<8x64xbf16>, vector<64x256xbf16>, vector<8x256xf32> -> vector<8x256xf32>
    %374 = arith.addf %372, %373 : vector<8x256xf32>
    %cst_105 = arith.constant 0.000000e+00 : f32
    %375 = vector.broadcast %cst_105 : f32 to vector<8x256xf32>
    %376 = arith.subf %375, %374 : vector<8x256xf32>
    %377 = math.exp %376 : vector<8x256xf32>
    %cst_106 = arith.constant 1.000000e+00 : f32
    %378 = vector.broadcast %cst_106 : f32 to vector<8x256xf32>
    %379 = arith.addf %378, %377 : vector<8x256xf32>
    %380 = tpu.reciprocal %379 {approx = true} : vector<8x256xf32> -> vector<8x256xf32>
    %381 = vector.extract_strided_slice %380 {offsets = [0, 0], sizes = [8, 64], strides = [1, 1]} : vector<8x256xf32> to vector<8x64xf32>
    %382 = vector.extract_strided_slice %380 {offsets = [0, 64], sizes = [8, 64], strides = [1, 1]} : vector<8x256xf32> to vector<8x64xf32>
    %383 = vector.extract_strided_slice %380 {offsets = [0, 128], sizes = [8, 64], strides = [1, 1]} : vector<8x256xf32> to vector<8x64xf32>
    %cst_107 = arith.constant 2.000000e+00 : f32
    %384 = vector.broadcast %cst_107 : f32 to vector<8x64xf32>
    %385 = arith.mulf %384, %383 : vector<8x64xf32>
    %cst_108 = arith.constant 1.000000e+00 : f32
    %386 = vector.broadcast %cst_108 : f32 to vector<8x64xf32>
    %387 = arith.subf %385, %386 : vector<8x64xf32>
    %388 = vector.extract_strided_slice %380 {offsets = [0, 192], sizes = [8, 64], strides = [1, 1]} : vector<8x256xf32> to vector<8x64xf32>
    %389 = arith.mulf %382, %371 : vector<8x64xf32>
    %390 = arith.mulf %381, %387 : vector<8x64xf32>
    %391 = arith.addf %389, %390 : vector<8x64xf32>
    %392 = math.tanh %391 : vector<8x64xf32>
    %393 = arith.mulf %388, %392 : vector<8x64xf32>
    %394 = arith.truncf %393 : vector<8x64xf32> to vector<8x64xbf16>
    %c32_i32_109 = arith.constant 32 : i32
    %395 = vector.broadcast %c32_i32_109 : i32 to vector<8x64xi32>
    %396 = arith.cmpi slt, %28, %395 : vector<8x64xi32>
    %c11_i32_110 = arith.constant 11 : i32
    %c4_i32_111 = arith.constant 4 : i32
    %397 = vector.broadcast %c11_i32_110 : i32 to vector<8x64xi32>
    %398 = vector.broadcast %c4_i32_111 : i32 to vector<8x64xi32>
    %399 = arith.select %396, %397, %398 : vector<8x64xi1>, vector<8x64xi32>
    %400 = arith.cmpi sgt, %27, %399 : vector<8x64xi32>
    %401 = arith.select %400, %394, %370 : vector<8x64xi1>, vector<8x64xbf16>
    %402 = arith.select %400, %391, %371 : vector<8x64xi1>, vector<8x64xf32>
    %c96 = arith.constant 96 : index
    %c0_112 = arith.constant 0 : index
    %403 = vector.load %arg7[%c96, %c0_112] : memref<128x256xf32, #tpu.memory_space<vmem>>, vector<8x256xf32>
    %cst_113 = arith.constant dense<0.000000e+00> : vector<8x256xf32>
    %404 = tpu.matmul %401, %24, %cst_113 {dimension_numbers = #tpu.dot_dimension_numbers<[1], [0], [0], [1], [0, 0, 1, 1], [], []>} : vector<8x64xbf16>, vector<64x256xbf16>, vector<8x256xf32> -> vector<8x256xf32>
    %405 = arith.addf %403, %404 : vector<8x256xf32>
    %cst_114 = arith.constant 0.000000e+00 : f32
    %406 = vector.broadcast %cst_114 : f32 to vector<8x256xf32>
    %407 = arith.subf %406, %405 : vector<8x256xf32>
    %408 = math.exp %407 : vector<8x256xf32>
    %cst_115 = arith.constant 1.000000e+00 : f32
    %409 = vector.broadcast %cst_115 : f32 to vector<8x256xf32>
    %410 = arith.addf %409, %408 : vector<8x256xf32>
    %411 = tpu.reciprocal %410 {approx = true} : vector<8x256xf32> -> vector<8x256xf32>
    %412 = vector.extract_strided_slice %411 {offsets = [0, 0], sizes = [8, 64], strides = [1, 1]} : vector<8x256xf32> to vector<8x64xf32>
    %413 = vector.extract_strided_slice %411 {offsets = [0, 64], sizes = [8, 64], strides = [1, 1]} : vector<8x256xf32> to vector<8x64xf32>
    %414 = vector.extract_strided_slice %411 {offsets = [0, 128], sizes = [8, 64], strides = [1, 1]} : vector<8x256xf32> to vector<8x64xf32>
    %cst_116 = arith.constant 2.000000e+00 : f32
    %415 = vector.broadcast %cst_116 : f32 to vector<8x64xf32>
    %416 = arith.mulf %415, %414 : vector<8x64xf32>
    %cst_117 = arith.constant 1.000000e+00 : f32
    %417 = vector.broadcast %cst_117 : f32 to vector<8x64xf32>
    %418 = arith.subf %416, %417 : vector<8x64xf32>
    %419 = vector.extract_strided_slice %411 {offsets = [0, 192], sizes = [8, 64], strides = [1, 1]} : vector<8x256xf32> to vector<8x64xf32>
    %420 = arith.mulf %413, %402 : vector<8x64xf32>
    %421 = arith.mulf %412, %418 : vector<8x64xf32>
    %422 = arith.addf %420, %421 : vector<8x64xf32>
    %423 = math.tanh %422 : vector<8x64xf32>
    %424 = arith.mulf %419, %423 : vector<8x64xf32>
    %425 = arith.truncf %424 : vector<8x64xf32> to vector<8x64xbf16>
    %c32_i32_118 = arith.constant 32 : i32
    %426 = vector.broadcast %c32_i32_118 : i32 to vector<8x64xi32>
    %427 = arith.cmpi slt, %28, %426 : vector<8x64xi32>
    %c12_i32_119 = arith.constant 12 : i32
    %c3_i32_120 = arith.constant 3 : i32
    %428 = vector.broadcast %c12_i32_119 : i32 to vector<8x64xi32>
    %429 = vector.broadcast %c3_i32_120 : i32 to vector<8x64xi32>
    %430 = arith.select %427, %428, %429 : vector<8x64xi1>, vector<8x64xi32>
    %431 = arith.cmpi sgt, %27, %430 : vector<8x64xi32>
    %432 = arith.select %431, %425, %401 : vector<8x64xi1>, vector<8x64xbf16>
    %433 = arith.select %431, %422, %402 : vector<8x64xi1>, vector<8x64xf32>
    %c104 = arith.constant 104 : index
    %c0_121 = arith.constant 0 : index
    %434 = vector.load %arg7[%c104, %c0_121] : memref<128x256xf32, #tpu.memory_space<vmem>>, vector<8x256xf32>
    %cst_122 = arith.constant dense<0.000000e+00> : vector<8x256xf32>
    %435 = tpu.matmul %432, %24, %cst_122 {dimension_numbers = #tpu.dot_dimension_numbers<[1], [0], [0], [1], [0, 0, 1, 1], [], []>} : vector<8x64xbf16>, vector<64x256xbf16>, vector<8x256xf32> -> vector<8x256xf32>
    %436 = arith.addf %434, %435 : vector<8x256xf32>
    %cst_123 = arith.constant 0.000000e+00 : f32
    %437 = vector.broadcast %cst_123 : f32 to vector<8x256xf32>
    %438 = arith.subf %437, %436 : vector<8x256xf32>
    %439 = math.exp %438 : vector<8x256xf32>
    %cst_124 = arith.constant 1.000000e+00 : f32
    %440 = vector.broadcast %cst_124 : f32 to vector<8x256xf32>
    %441 = arith.addf %440, %439 : vector<8x256xf32>
    %442 = tpu.reciprocal %441 {approx = true} : vector<8x256xf32> -> vector<8x256xf32>
    %443 = vector.extract_strided_slice %442 {offsets = [0, 0], sizes = [8, 64], strides = [1, 1]} : vector<8x256xf32> to vector<8x64xf32>
    %444 = vector.extract_strided_slice %442 {offsets = [0, 64], sizes = [8, 64], strides = [1, 1]} : vector<8x256xf32> to vector<8x64xf32>
    %445 = vector.extract_strided_slice %442 {offsets = [0, 128], sizes = [8, 64], strides = [1, 1]} : vector<8x256xf32> to vector<8x64xf32>
    %cst_125 = arith.constant 2.000000e+00 : f32
    %446 = vector.broadcast %cst_125 : f32 to vector<8x64xf32>
    %447 = arith.mulf %446, %445 : vector<8x64xf32>
    %cst_126 = arith.constant 1.000000e+00 : f32
    %448 = vector.broadcast %cst_126 : f32 to vector<8x64xf32>
    %449 = arith.subf %447, %448 : vector<8x64xf32>
    %450 = vector.extract_strided_slice %442 {offsets = [0, 192], sizes = [8, 64], strides = [1, 1]} : vector<8x256xf32> to vector<8x64xf32>
    %451 = arith.mulf %444, %433 : vector<8x64xf32>
    %452 = arith.mulf %443, %449 : vector<8x64xf32>
    %453 = arith.addf %451, %452 : vector<8x64xf32>
    %454 = math.tanh %453 : vector<8x64xf32>
    %455 = arith.mulf %450, %454 : vector<8x64xf32>
    %456 = arith.truncf %455 : vector<8x64xf32> to vector<8x64xbf16>
    %c32_i32_127 = arith.constant 32 : i32
    %457 = vector.broadcast %c32_i32_127 : i32 to vector<8x64xi32>
    %458 = arith.cmpi slt, %28, %457 : vector<8x64xi32>
    %c13_i32_128 = arith.constant 13 : i32
    %c2_i32_129 = arith.constant 2 : i32
    %459 = vector.broadcast %c13_i32_128 : i32 to vector<8x64xi32>
    %460 = vector.broadcast %c2_i32_129 : i32 to vector<8x64xi32>
    %461 = arith.select %458, %459, %460 : vector<8x64xi1>, vector<8x64xi32>
    %462 = arith.cmpi sgt, %27, %461 : vector<8x64xi32>
    %463 = arith.select %462, %456, %432 : vector<8x64xi1>, vector<8x64xbf16>
    %464 = arith.select %462, %453, %433 : vector<8x64xi1>, vector<8x64xf32>
    %c112 = arith.constant 112 : index
    %c0_130 = arith.constant 0 : index
    %465 = vector.load %arg7[%c112, %c0_130] : memref<128x256xf32, #tpu.memory_space<vmem>>, vector<8x256xf32>
    %cst_131 = arith.constant dense<0.000000e+00> : vector<8x256xf32>
    %466 = tpu.matmul %463, %24, %cst_131 {dimension_numbers = #tpu.dot_dimension_numbers<[1], [0], [0], [1], [0, 0, 1, 1], [], []>} : vector<8x64xbf16>, vector<64x256xbf16>, vector<8x256xf32> -> vector<8x256xf32>
    %467 = arith.addf %465, %466 : vector<8x256xf32>
    %cst_132 = arith.constant 0.000000e+00 : f32
    %468 = vector.broadcast %cst_132 : f32 to vector<8x256xf32>
    %469 = arith.subf %468, %467 : vector<8x256xf32>
    %470 = math.exp %469 : vector<8x256xf32>
    %cst_133 = arith.constant 1.000000e+00 : f32
    %471 = vector.broadcast %cst_133 : f32 to vector<8x256xf32>
    %472 = arith.addf %471, %470 : vector<8x256xf32>
    %473 = tpu.reciprocal %472 {approx = true} : vector<8x256xf32> -> vector<8x256xf32>
    %474 = vector.extract_strided_slice %473 {offsets = [0, 0], sizes = [8, 64], strides = [1, 1]} : vector<8x256xf32> to vector<8x64xf32>
    %475 = vector.extract_strided_slice %473 {offsets = [0, 64], sizes = [8, 64], strides = [1, 1]} : vector<8x256xf32> to vector<8x64xf32>
    %476 = vector.extract_strided_slice %473 {offsets = [0, 128], sizes = [8, 64], strides = [1, 1]} : vector<8x256xf32> to vector<8x64xf32>
    %cst_134 = arith.constant 2.000000e+00 : f32
    %477 = vector.broadcast %cst_134 : f32 to vector<8x64xf32>
    %478 = arith.mulf %477, %476 : vector<8x64xf32>
    %cst_135 = arith.constant 1.000000e+00 : f32
    %479 = vector.broadcast %cst_135 : f32 to vector<8x64xf32>
    %480 = arith.subf %478, %479 : vector<8x64xf32>
    %481 = vector.extract_strided_slice %473 {offsets = [0, 192], sizes = [8, 64], strides = [1, 1]} : vector<8x256xf32> to vector<8x64xf32>
    %482 = arith.mulf %475, %464 : vector<8x64xf32>
    %483 = arith.mulf %474, %480 : vector<8x64xf32>
    %484 = arith.addf %482, %483 : vector<8x64xf32>
    %485 = math.tanh %484 : vector<8x64xf32>
    %486 = arith.mulf %481, %485 : vector<8x64xf32>
    %487 = arith.truncf %486 : vector<8x64xf32> to vector<8x64xbf16>
    %c32_i32_136 = arith.constant 32 : i32
    %488 = vector.broadcast %c32_i32_136 : i32 to vector<8x64xi32>
    %489 = arith.cmpi slt, %28, %488 : vector<8x64xi32>
    %c14_i32_137 = arith.constant 14 : i32
    %c1_i32_138 = arith.constant 1 : i32
    %490 = vector.broadcast %c14_i32_137 : i32 to vector<8x64xi32>
    %491 = vector.broadcast %c1_i32_138 : i32 to vector<8x64xi32>
    %492 = arith.select %489, %490, %491 : vector<8x64xi1>, vector<8x64xi32>
    %493 = arith.cmpi sgt, %27, %492 : vector<8x64xi32>
    %494 = arith.select %493, %487, %463 : vector<8x64xi1>, vector<8x64xbf16>
    %495 = arith.select %493, %484, %464 : vector<8x64xi1>, vector<8x64xf32>
    %c120 = arith.constant 120 : index
    %c0_139 = arith.constant 0 : index
    %496 = vector.load %arg7[%c120, %c0_139] : memref<128x256xf32, #tpu.memory_space<vmem>>, vector<8x256xf32>
    %cst_140 = arith.constant dense<0.000000e+00> : vector<8x256xf32>
    %497 = tpu.matmul %494, %24, %cst_140 {dimension_numbers = #tpu.dot_dimension_numbers<[1], [0], [0], [1], [0, 0, 1, 1], [], []>} : vector<8x64xbf16>, vector<64x256xbf16>, vector<8x256xf32> -> vector<8x256xf32>
    %498 = arith.addf %496, %497 : vector<8x256xf32>
    %cst_141 = arith.constant 0.000000e+00 : f32
    %499 = vector.broadcast %cst_141 : f32 to vector<8x256xf32>
    %500 = arith.subf %499, %498 : vector<8x256xf32>
    %501 = math.exp %500 : vector<8x256xf32>
    %cst_142 = arith.constant 1.000000e+00 : f32
    %502 = vector.broadcast %cst_142 : f32 to vector<8x256xf32>
    %503 = arith.addf %502, %501 : vector<8x256xf32>
    %504 = tpu.reciprocal %503 {approx = true} : vector<8x256xf32> -> vector<8x256xf32>
    %505 = vector.extract_strided_slice %504 {offsets = [0, 0], sizes = [8, 64], strides = [1, 1]} : vector<8x256xf32> to vector<8x64xf32>
    %506 = vector.extract_strided_slice %504 {offsets = [0, 64], sizes = [8, 64], strides = [1, 1]} : vector<8x256xf32> to vector<8x64xf32>
    %507 = vector.extract_strided_slice %504 {offsets = [0, 128], sizes = [8, 64], strides = [1, 1]} : vector<8x256xf32> to vector<8x64xf32>
    %cst_143 = arith.constant 2.000000e+00 : f32
    %508 = vector.broadcast %cst_143 : f32 to vector<8x64xf32>
    %509 = arith.mulf %508, %507 : vector<8x64xf32>
    %cst_144 = arith.constant 1.000000e+00 : f32
    %510 = vector.broadcast %cst_144 : f32 to vector<8x64xf32>
    %511 = arith.subf %509, %510 : vector<8x64xf32>
    %512 = vector.extract_strided_slice %504 {offsets = [0, 192], sizes = [8, 64], strides = [1, 1]} : vector<8x256xf32> to vector<8x64xf32>
    %513 = arith.mulf %506, %495 : vector<8x64xf32>
    %514 = arith.mulf %505, %511 : vector<8x64xf32>
    %515 = arith.addf %513, %514 : vector<8x64xf32>
    %516 = math.tanh %515 : vector<8x64xf32>
    %517 = arith.mulf %512, %516 : vector<8x64xf32>
    %518 = arith.truncf %517 : vector<8x64xf32> to vector<8x64xbf16>
    %c32_i32_145 = arith.constant 32 : i32
    %519 = vector.broadcast %c32_i32_145 : i32 to vector<8x64xi32>
    %520 = arith.cmpi slt, %28, %519 : vector<8x64xi32>
    %c15_i32_146 = arith.constant 15 : i32
    %c0_i32_147 = arith.constant 0 : i32
    %521 = vector.broadcast %c15_i32_146 : i32 to vector<8x64xi32>
    %522 = vector.broadcast %c0_i32_147 : i32 to vector<8x64xi32>
    %523 = arith.select %520, %521, %522 : vector<8x64xi1>, vector<8x64xi32>
    %524 = arith.cmpi sgt, %27, %523 : vector<8x64xi32>
    %525 = arith.select %524, %518, %494 : vector<8x64xi1>, vector<8x64xbf16>
    %526 = arith.extf %525 : vector<8x64xbf16> to vector<8x64xf32>
    %c0_148 = arith.constant 0 : index
    %c0_149 = arith.constant 0 : index
    %c0_150 = arith.constant 0 : index
    %527 = vector.load %arg6[%c0_148, %c0_149, %c0_150] : memref<1x8x64xf32, #tpu.memory_space<vmem>>, vector<1x8x64xf32>
    %528 = vector.shape_cast %527 : vector<1x8x64xf32> to vector<8x64xf32>
    %529 = vector.shape_cast %526 : vector<8x64xf32> to vector<1x8x64xf32>
    tpu.vector_store %arg6[%c0_148, %c0_149, %c0_150], %529 {strides = array<i32>} : memref<1x8x64xf32, #tpu.memory_space<vmem>>, vector<1x8x64xf32>,
    return
  }
  func.func @transform_0(%arg0: i32) -> (i32, i32, i32) {
    %c0_i32 = arith.constant 0 : i32
    %c0_i32_0 = arith.constant 0 : i32
    %c0_i32_1 = arith.constant 0 : i32
    return %c0_i32, %arg0, %c0_i32_0 : i32, i32, i32
  }
  func.func @transform_1(%arg0: i32) -> (i32, i32) {
    %c0_i32 = arith.constant 0 : i32
    %c0_i32_0 = arith.constant 0 : i32
    return %arg0, %c0_i32 : i32, i32
  }
  func.func @transform_2(%arg0: i32) -> (i32, i32, i32) {
    %c0_i32 = arith.constant 0 : i32
    %c0_i32_0 = arith.constant 0 : i32
    %c0_i32_1 = arith.constant 0 : i32
    %c0_i32_2 = arith.constant 0 : i32
    return %c0_i32, %c0_i32_0, %c0_i32_1 : i32, i32, i32
  }
  func.func @transform_3(%arg0: i32) -> (i32, i32, i32) {
    %c0_i32 = arith.constant 0 : i32
    %c0_i32_0 = arith.constant 0 : i32
    %c0_i32_1 = arith.constant 0 : i32
    %c0_i32_2 = arith.constant 0 : i32
    return %c0_i32, %c0_i32_0, %c0_i32_1 : i32, i32, i32
  }
  func.func @transform_4(%arg0: i32) -> (i32, i32, i32) {
    %c0_i32 = arith.constant 0 : i32
    %c0_i32_0 = arith.constant 0 : i32
    %c0_i32_1 = arith.constant 0 : i32
    %c0_i32_2 = arith.constant 0 : i32
    return %c0_i32, %c0_i32_0, %c0_i32_1 : i32, i32, i32
  }
  func.func @transform_5(%arg0: i32) -> (i32, i32, i32) {
    %c0_i32 = arith.constant 0 : i32
    %c0_i32_0 = arith.constant 0 : i32
    %c0_i32_1 = arith.constant 0 : i32
    return %c0_i32, %arg0, %c0_i32_0 : i32, i32, i32
  }
}

</mosaic_0001>

<bundles_post_ra>
// kernel: reverse
= control target key start
LH: loop header
LB: loop body
LE: loop exit
PB: predicated region body
PF: predicated region fallthrough
CT: control target
= control target key end

     0   :  { %v2_v0 = vlaneseq  ;;  %s99_s0 = inlined_call_operand.vmem [shape: s32[8,16], index: 0, kind: input, shape index: {}]   ;;  %s100_s1 = inlined_call_operand.vmem [shape: s32[8,16], index: 1, kind: output, shape index: {}]  }
   0x1   :  { %v33_v2 = vld [vmem:[%s99_s0] sm:$0xff] }
   0x2   :  { %v3_v1 = vsub.s32 15, %v2_v0 }
   0x4   :  { %4 = vset.pattern.permute.xlu0 %v3_v1 }
   0x5   :  { %39 = vperm.xlu0 %4, %v33_v2  }
  0x80   :  { %v40_v3 = vpop.permute.xlu0 %39 }
  0x81   :  { %71 = vst [vmem:[%s100_s1] sm:$0xff] %v40_v3 }

// kernel: _char_lstm_forward.1
= control target key start
LH: loop header
LB: loop body
LE: loop exit
PB: predicated region body
PF: predicated region fallthrough
CT: control target
= control target key end

     0   :  { %v2362_v2 = vmov 0   ;;  %s3286_s0 = inlined_call_operand.vmem [shape: s32[2,128,1], index: 0, kind: input, shape index: {}]   ;;  %s3287_s1 = inlined_call_operand.vmem [shape: s32[8,1], index: 1, kind: input, shape index: {}]   ;;  %s3288_s2 = inlined_call_operand.vmem [shape: bf16[1,64,256], index: 2, kind: input, shape index: {}]   ;;  %s3289_s3 = inlined_call_operand.vmem [shape: bf16[1,64,256], index: 3, kind: input, shape index: {}]   ;;  %s3290_s4 = inlined_call_operand.vmem [shape: f32[1,1,256], index: 4, kind: input, shape index: {}]   ;;  %s3291_s5 = inlined_call_operand.hbm [shape: f32[1,8,64], index: 5, kind: output, shape index: {}]  }
   0x1   :  { %v26_v0 = vld [vmem:[%s3286_s0] sm:$0xff]  ;;  %2144 = vset.pattern.permute.xlu0 %v2362_v2  ;;  %2145 = vset.pattern.permute.xlu1 %v2362_v2  ;;  %v27_v4 = vld [vmem:[%s3286_s0 + $0x8] sm:$0xff]  ;;  %v2428_v6 = vld [vmem:[%s3289_s3 + $0x34] ss:$8 sps:$4 sm:$0xff]  }
   0x2   :  { %v2022_v1 = vld [vmem:[%s3286_s0 + $0x80] sm:$0xff]  ;;  %v2023_v5 = vld [vmem:[%s3286_s0 + $0x88] sm:$0xff]  ;;  %43 = vperm.xlu0 %2144, %v26_v0   ;;  %v2433_v7 = vld [vmem:[%s3289_s3 + $0x30] ss:$8 sps:$4 sm:$0xff]   ;;  %578 = vmatprep.mubr.bf16.mxu1 %v2362_v2 }
   0x3   :  { %v123_v3 = vadd.s32 32, %v2022_v1  ;;  %v124_v8 = vadd.s32 32, %v2023_v5  ;;  %v2149_v9 = vld [vmem:[%s3288_s2 + $0x34] ss:$8 sps:$4 sm:$0xff]   ;;  %376 = vmatprep.mubr.bf16.mxu0 %v2362_v2  ;;  %554 = vmatprep.subr.bf16.mxu1 %v2428_v6  ;;  %v2444_v10 = vld [vmem:[%s3289_s3 + $0x24] ss:$8 sps:$4 sm:$0xff]  }
   0x4   :  { %v497_v11 = vld [vmem:[%s3287_s1] sm:$0xff]  ;;  %555 = vmatpush1.bf16.msra.mxu1 %v2433_v7  ;;  %352 = vmatprep.subr.bf16.mxu0 %v2149_v9  ;;  %v2153_v12 = vld [vmem:[%s3288_s2 + $0x30] ss:$8 sps:$4 sm:$0xff]   ;;  %v2465_v15 = vld [vmem:[%s3289_s3 + $0x14] ss:$8 sps:$4 sm:$0xff]  }
   0x5   :  { %140 = vperm.xlu1 %2145, %v123_v3   ;;  %v2456_v13 = vld [vmem:[%s3289_s3 + $0x20] ss:$8 sps:$4 sm:$0xff]   ;;  %556 = vmatprep.subr.bf16.mxu1 %v2444_v10  ;;  %v2155_v14 = vld [vmem:[%s3288_s2 + $0x24] ss:$8 sps:$4 sm:$0xff]   ;;  %v2473_v17 = vld [vmem:[%s3289_s3 + $0x10] ss:$8 sps:$4 sm:$0xff]  }
   0x6   :  { %46 = vperm.xlu0 %2144, %v27_v4   ;;  %353 = vmatpush1.bf16.msra.mxu0 %v2153_v12  ;;  %v2159_v16 = vld [vmem:[%s3288_s2 + $0x20] ss:$8 sps:$4 sm:$0xff]   ;;  %v2161_v18 = vld [vmem:[%s3288_s2 + $0x14] ss:$8 sps:$4 sm:$0xff]   ;;  %v2483_v19 = vld [vmem:[%s3289_s3 + $0x4] ss:$8 sps:$4 sm:$0xff]  }
   0x7   :  { %354 = vmatprep.subr.bf16.mxu0 %v2155_v14  ;;  %v2165_v20 = vld [vmem:[%s3288_s2 + $0x10] ss:$8 sps:$4 sm:$0xff]   ;;  %v2167_v21 = vld [vmem:[%s3288_s2 + $0x4] ss:$8 sps:$4 sm:$0xff]   ;;  %v2495_v22 = vld [vmem:[%s3289_s3] ss:$8 sps:$4 sm:$0xff]  }
   0x8   :  { %557 = vmatpush1.bf16.msra.mxu1 %v2456_v13 }
   0x9   :  { %143 = vperm.xlu1 %2145, %v124_v8   ;;  %558 = vmatprep.subr.bf16.mxu1 %v2465_v15 }
   0xa   :  { %499 = vperm.xlu0 %2144, %v497_v11   ;;  %355 = vmatpush1.bf16.msra.mxu0 %v2159_v16 }
   0xb   :  { %356 = vmatprep.subr.bf16.mxu0 %v2161_v18 }
   0xc   :  { %559 = vmatpush1.bf16.msra.mxu1 %v2473_v17 }
   0xd   :  { %10 = vsyncpa [#allocation4], 0  ;;  %560 = vmatprep.subr.bf16.mxu1 %v2483_v19  ;;  %v2169_v23 = vld [vmem:[%s3288_s2] ss:$8 sps:$4 sm:$0xff]   ;;  %v24_v24 = vlaneseq  ;;  %v2363_v30 = vmov 15   ;;  %v2364_v32 = vmov 0.0  }
   0xe   :  { %357 = vmatpush1.bf16.msra.mxu0 %v2165_v20  ;;  %vm319_vm7 = vcmask 523264   ;;  %s2365_s2 = smov 64   ;;  %v267_v45 = vld [vmem:[%s3290_s4] sm:$0x3]  ;;  %v2366_v20 = vmov 14  }
   0xf   :  { %358 = vmatprep.subr.bf16.mxu0 %v2167_v21  ;;  %v2514_v25 = vand.u32 127, %v24_v24  ;;  %v270_v43 = vshrl.u32 %v24_v24, 7 }
  0x10   :  { %561 = vmatpush1.bf16.msra.mxu1 %v2495_v22 }
  0x11   :  { %643 = vmatprep.subr.bf16.mxu1 %v2428_v6  ;;  %vm611_vm2 = vcmp.lt.s32.totalorder %v2514_v25, 32  ;;  %v271_v44 = vsub.s32 0, %v270_v43  ;;  %v275_v46 = vsub.s32 1, %v270_v43 }
  0x12   :  { %359 = vmatpush1.bf16.msra.mxu0 %v2169_v23  ;;  %v2523_v31 = vsel %vm611_vm2, 0, %v2363_v30  ;;  %v2564_v21 = vsel %vm611_vm2, 1, %v2366_v20 }
  0x13   :  { %579 = vmatmul.mubr.bf16.vlgmr.msra.gmra.mxu1 %v2362_v2  ;;  %919 = vmatprep.subr.bf16.mxu0 %v2428_v6  ;;  %v2550_v47 = vrot.slane %v267_v45, %v271_v44  ;;  %v2552_v48 = vrot.slane %v267_v45, %v275_v46 }
  0x14   :  { %644 = vmatpush1.bf16.msra.mxu1 %v2433_v7  ;;  %667 = vmatprep.mubr.bf16.mxu1 %v2362_v2 }
  0x15   :  { %645 = vmatprep.subr.bf16.mxu1 %v2444_v10 }
  0x18   :  { %646 = vmatpush1.bf16.msra.mxu1 %v2456_v13 }
  0x19   :  { %647 = vmatprep.subr.bf16.mxu1 %v2465_v15 }
  0x1c   :  { %648 = vmatpush1.bf16.msra.mxu1 %v2473_v17 }
  0x1d   :  { %649 = vmatprep.subr.bf16.mxu1 %v2483_v19 }
  0x20   :  { %650 = vmatpush1.bf16.msra.mxu1 %v2495_v22 }
  0x21   :  { %735 = vmatprep.subr.bf16.mxu1 %v2428_v6 }
  0x7d   :  { %v44_v26 = vpop.permute.xlu0 %43 }
  0x7e   :  { %vm90_vm0 = vcmp.eq.s32.totalorder %v2514_v25, %v44_v26 }
  0x80   :  { %v141_v27 = vpop.permute.xlu1 %140 }
  0x81   :  { %vm187_vm1 = vcmp.eq.s32.totalorder %v2514_v25, %v141_v27  ;;  %v47_v28 = vpop.permute.xlu0 %46 }
  0x82   :  { %vm203_vm3 = vmor %vm90_vm0, %vm187_vm1  ;;  %vm91_vm4 = vcmp.eq.s32.totalorder %v2514_v25, %v47_v28  ;;  %v29_v28 = vld [vmem:[%s3286_s0 + $0x18] sm:$0xff] }
  0x83   :  { %v2038_v33 = vsel %vm203_vm3, 1.0, %v2364_v32 }
  0x84   :  { %v144_v29 = vpop.permute.xlu1 %143 }
  0x85   :  { %vm188_vm5 = vcmp.eq.s32.totalorder %v2514_v25, %v144_v29  ;;  %v2527_v35 = vpop.permute.xlu0 %499  ;;  %v2025_v29 = vld [vmem:[%s3286_s0 + $0x98] sm:$0xff] }
  0x86   :  { %vm204_vm6 = vmor %vm91_vm4, %vm188_vm5  ;;  %vm613_vm8 = vcmp.gt.s32.totalorder %v2527_v35, %v2523_v31  ;;  %vm705_vm11 = vcmp.gt.s32.totalorder %v2527_v35, %v2564_v21  ;;  %v126_v30 = vadd.s32 32, %v2025_v29 }
  0x87   :  { %v2039_v34 = vsel %vm204_vm6, 1.0, %v2364_v32  ;;  %vm614_vm9 = vmpackc.low %vm613_vm8, %vm613_vm8 }
  0x88   :  { %v251_v36 = vpack.c.bf16 %v2039_v34, %v2038_v33  ;;  %v615_v37 = vsel %vm614_vm9, 65537, %v2362_v2  ;;  %vm706_vm12 = vmpackc.low %vm705_vm11, %vm705_vm11 }
  0x89   :  { %v2079_v38 = vcombine.low %v615_v37, %v615_v37  ;;  %v707_v26 = vsel %vm706_vm12, 65537, %v2362_v2 }
  0x8a   :  { %2062 = vmatmul.mubr.msk.bf16.vlgmr.msra.gmra.mxu0 %vm319_vm7, %v251_v36  ;;  %v2082_v27 = vcombine.low %v707_v26, %v707_v26 }
  0x8b   :  { %386 = vmatprep.mubr.bf16.mxu0 %v2362_v2  ;;  %920 = vmatpush1.bf16.msra.mxu0 %v2433_v7 }
  0x8c   :  { %921 = vmatprep.subr.bf16.mxu0 %v2444_v10  ;;  %618 = vrot.lane.b32.xlu0 %v2079_v38, %s2365_s2 }
  0x8f   :  { %922 = vmatpush1.bf16.msra.mxu0 %v2456_v13 }
  0x90   :  { %923 = vmatprep.subr.bf16.mxu0 %v2465_v15 }
  0x93   :  { %924 = vmatpush1.bf16.msra.mxu0 %v2473_v17 }
  0x94   :  { %925 = vmatprep.subr.bf16.mxu0 %v2483_v19 }
  0x97   :  { %926 = vmatpush1.bf16.msra.mxu0 %v2495_v22 }
  0x98   :  { %1103 = vmatprep.subr.bf16.mxu0 %v2428_v6 }
  0xd3   :  { %v580_v39 = vpop.f32.mrf.mxu1 }
  0xd5   :  { %v582_v40 = vpop.f32.mrf.mxu1 }
  0xd7   :  { %v584_v41 = vpop.f32.mrf.mxu1 }
  0xd9   :  { %v585_v42 = vpop.f32.mrf.mxu1 }
  0xfe   :  { %v619_v12 = vpop.permute.xlu0 %618 }
  0xff   :  { %vm620_vm10 = vcmp.ne.s16.totalorder %v619_v12, 0 }
 0x14a   :  { %v378_v49 = vpop.f32.mrf.mxu0 }
 0x14b   :  { %v379_v50 = vadd.f32 %v378_v49, %v2550_v47 }
 0x14c   :  { %v380_v51 = vpop.f32.mrf.mxu0 }
 0x14d   :  { %v587_v52 = vadd.f32 %v580_v39, %v379_v50  ;;  %v381_v53 = vadd.f32 %v380_v51, %v2552_v48 }
 0x14e   :  { %v382_v33 = vpop.f32.mrf.mxu0 }
 0x14f   :  { %v589_v54 = vsub.f32 0.0, %v587_v52  ;;  %v588_v55 = vadd.f32 %v582_v40, %v381_v53  ;;  %v383_v36 = vadd.f32 %v382_v33, %v2550_v47 }
 0x150   :  { %v384_v34 = vpop.f32.mrf.mxu0 }
 0x151   :  { %v591_v56 = vmul.f32 1.442695, %v589_v54  ;;  %v590_v57 = vsub.f32 0.0, %v588_v55  ;;  %v385_v38 = vadd.f32 %v384_v34, %v2552_v48 }
 0x153   :  { %v593_v58 = vmul.f32 1.442695, %v590_v57  ;;  %2170 = vpow2.f32 %v591_v56 }
 0x155   :  { %2172 = vpow2.f32 %v593_v58 }
 0x160   :  { %v2171_v59 = vpop.eup %2170 }
 0x161   :  { %v595_v62 = vadd.f32 1.0, %v2171_v59  ;;  %v28_v59 = vld [vmem:[%s3286_s0 + $0x10] sm:$0xff] }
 0x162   :  { %v2173_v60 = vpop.eup %2172 }
 0x163   :  { %v596_v61 = vadd.f32 1.0, %v2173_v60  ;;  %v2024_v60 = vld [vmem:[%s3286_s0 + $0x90] sm:$0xff] }
 0x165   :  { %2174 = vrcp.f32 %v596_v61  ;;  %v125_v61 = vadd.s32 32, %v2024_v60 }
 0x166   :  { %2176 = vrcp.f32 %v595_v62 }
 0x172   :  { %v2175_v63 = vpop.eup %2174 }
 0x173   :  { %v599_v0 = vmul.f32 2.0, %v2175_v63  ;;  %v2177_v3 = vpop.eup %2176 }
 0x174   :  { %v601_v5 = vmul.f32 0.0, %v2177_v3 }
 0x175   :  { %v2078_v1 = vadd.f32 -1.0, %v599_v0 }
 0x177   :  { %v602_v4 = vmul.f32 %v2177_v3, %v2078_v1 }
 0x179   :  { %604 = vrot.lane.b32.xlu1 %v602_v4, %s2365_s2 }
 0x1eb   :  { %v605_v8 = vpop.permute.xlu1 %604 }
 0x1ec   :  { %v607_v9 = vadd.f32 %v605_v8, %v601_v5 }
 0x1ee   :  { %2178 = vtanh.f32 %v607_v9  ;;  %623 = vrot.lane.b32.xlu0 %v607_v9, %s2365_s2 }
 0x1fb   :  { %v2179_v11 = vpop.eup %2178 }
 0x1fc   :  { %v609_v14 = vmul.f32 %v2179_v11, %v2175_v63 }
 0x1fe   :  { %v610_v16 = vpack.c.bf16 %v609_v14, %v609_v14 }
 0x200   :  { %v2558_v18 = vsel %vm620_vm10, %v610_v16, 0 }
 0x201   :  { %630 = vrot.lane.b32.xlu1 %v2558_v18, %s2365_s2 }
 0x260   :  { %v624_v23 = vpop.permute.xlu0 %623 }
 0x261   :  { %v2575_v24 = vsel %vm613_vm8, %v624_v23, 0.0 }
 0x262   :  { %691 = vrot.lane.b32.xlu1 %v2575_v24, %s2365_s2 }
 0x266   :  { %710 = vrot.lane.b32.xlu1 %v2082_v27, %s2365_s2  ;;  %v2367_v27 = vmov 13  }
 0x26a   :  { %52 = vperm.xlu1 %2145, %v29_v28   ;;  %v2622_v28 = vsel %vm611_vm2, 2, %v2367_v27 }
 0x26b   :  { %vm797_vm5 = vcmp.gt.s32.totalorder %v2527_v35, %v2622_v28 }
 0x26c   :  { %vm798_vm6 = vmpackc.low %vm797_vm5, %vm797_vm5 }
 0x26e   :  { %149 = vperm.xlu1 %2145, %v126_v30   ;;  %v799_v30 = vsel %vm798_vm6, 65537, %v2362_v2 }
 0x273   :  { %v631_v31 = vpop.permute.xlu1 %630 }
 0x274   :  { %2080 = vmatmul.mubr.msk.bf16.vlgmr.msra.gmra.mxu1 %vm319_vm7, %v631_v31  ;;  %v2085_v31 = vcombine.low %v799_v30, %v799_v30 }
 0x275   :  { %736 = vmatpush1.bf16.msra.mxu1 %v2433_v7  ;;  %759 = vmatprep.mubr.bf16.mxu1 %v2362_v2 }
 0x276   :  { %737 = vmatprep.subr.bf16.mxu1 %v2444_v10 }
 0x279   :  { %738 = vmatpush1.bf16.msra.mxu1 %v2456_v13 }
 0x27a   :  { %739 = vmatprep.subr.bf16.mxu1 %v2465_v15 }
 0x27d   :  { %740 = vmatpush1.bf16.msra.mxu1 %v2473_v17 }
 0x27e   :  { %741 = vmatprep.subr.bf16.mxu1 %v2483_v19 }
 0x281   :  { %742 = vmatpush1.bf16.msra.mxu1 %v2495_v22 }
 0x282   :  { %827 = vmatprep.subr.bf16.mxu1 %v2428_v6 }
 0x2d4   :  { %v692_v62 = vpop.permute.xlu1 %691 }
 0x2d8   :  { %v711_v1 = vpop.permute.xlu1 %710 }
 0x2d9   :  { %vm712_vm4 = vcmp.ne.s16.totalorder %v711_v1, 0 }
 0x2e5   :  { %v53_v4 = vpop.permute.xlu1 %52 }
 0x2e6   :  { %vm93_vm14 = vcmp.eq.s32.totalorder %v2514_v25, %v53_v4  ;;  %v2368_v4 = vmov 12  }
 0x2e9   :  { %v150_v5 = vpop.permute.xlu1 %149 }
 0x2ea   :  { %vm190_vm13 = vcmp.eq.s32.totalorder %v2514_v25, %v150_v5  ;;  %v2661_v5 = vsel %vm611_vm2, 3, %v2368_v4  ;;  %v2028_v4 = vld [vmem:[%s3286_s0 + $0xb0] sm:$0xff] }
 0x2eb   :  { %vm206_vm15 = vmor %vm93_vm14, %vm190_vm13  ;;  %vm889_vm9 = vcmp.gt.s32.totalorder %v2527_v35, %v2661_v5  ;;  %v2849_v5 = vld [vmem:[%s3289_s3 + $0x24] ss:$8 sps:$4 sm:$0xff]  }
 0x2ec   :  { %v2041_v16 = vsel %vm206_vm15, 1.0, %v2364_v32  ;;  %vm890_vm10 = vmpackc.low %vm889_vm9, %vm889_vm9 }
 0x334   :  { %v669_v37 = vpop.f32.mrf.mxu1 }
 0x335   :  { %v676_v39 = vadd.f32 %v669_v37, %v383_v36 }
 0x336   :  { %v671_v40 = vpop.f32.mrf.mxu1 }
 0x337   :  { %v678_v41 = vsub.f32 0.0, %v676_v39  ;;  %v677_v42 = vadd.f32 %v671_v40, %v385_v38 }
 0x338   :  { %v673_v43 = vpop.f32.mrf.mxu1 }
 0x339   :  { %v680_v44 = vmul.f32 1.442695, %v678_v41  ;;  %v679_v45 = vsub.f32 0.0, %v677_v42 }
 0x33a   :  { %v674_v46 = vpop.f32.mrf.mxu1 }
 0x33b   :  { %v682_v49 = vmul.f32 1.442695, %v679_v45  ;;  %2180 = vpow2.f32 %v680_v44 }
 0x33d   :  { %2182 = vpow2.f32 %v682_v49 }
 0x348   :  { %v2181_v50 = vpop.eup %2180 }
 0x349   :  { %v684_v53 = vadd.f32 1.0, %v2181_v50 }
 0x34a   :  { %v2183_v51 = vpop.eup %2182 }
 0x34b   :  { %v685_v52 = vadd.f32 1.0, %v2183_v51 }
 0x34d   :  { %2184 = vrcp.f32 %v685_v52 }
 0x34e   :  { %2186 = vrcp.f32 %v684_v53 }
 0x35a   :  { %v2185_v54 = vpop.eup %2184 }
 0x35b   :  { %v688_v55 = vmul.f32 2.0, %v2185_v54  ;;  %v2187_v57 = vpop.eup %2186 }
 0x35c   :  { %v694_v63 = vmul.f32 %v2187_v57, %v692_v62 }
 0x35d   :  { %v2081_v56 = vadd.f32 -1.0, %v688_v55 }
 0x35f   :  { %v695_v58 = vmul.f32 %v2187_v57, %v2081_v56 }
 0x361   :  { %697 = vrot.lane.b32.xlu0 %v695_v58, %s2365_s2 }
 0x365   :  { %49 = vperm.xlu0 %2144, %v28_v59  }
 0x369   :  { %146 = vperm.xlu0 %2144, %v125_v61  }
 0x3d3   :  { %v698_v0 = vpop.permute.xlu0 %697 }
 0x3d4   :  { %v700_v3 = vadd.f32 %v698_v0, %v694_v63 }
 0x3d6   :  { %2188 = vtanh.f32 %v700_v3  ;;  %715 = vrot.lane.b32.xlu1 %v700_v3, %s2365_s2 }
 0x3e0   :  { %v50_v8 = vpop.permute.xlu0 %49 }
 0x3e1   :  { %vm92_vm0 = vcmp.eq.s32.totalorder %v2514_v25, %v50_v8 }
 0x3e3   :  { %v2189_v9 = vpop.eup %2188 }
 0x3e4   :  { %v147_v11 = vpop.permute.xlu0 %146  ;;  %v702_v12 = vmul.f32 %v2189_v9, %v2185_v54 }
 0x3e5   :  { %vm189_vm1 = vcmp.eq.s32.totalorder %v2514_v25, %v147_v11  ;;  %v891_v11 = vsel %vm890_vm10, 65537, %v2362_v2 }
 0x3e6   :  { %vm205_vm3 = vmor %vm92_vm0, %vm189_vm1  ;;  %v703_v14 = vpack.c.bf16 %v702_v12, %v702_v12  ;;  %v2088_v12 = vcombine.low %v891_v11, %v891_v11  ;;  %v34_v11 = vld [vmem:[%s3286_s0 + $0x40] sm:$0xff] }
 0x3e7   :  { %v2040_v20 = vsel %vm205_vm3, 1.0, %v2364_v32 }
 0x3e8   :  { %v252_v23 = vpack.c.bf16 %v2041_v16, %v2040_v20  ;;  %v2614_v26 = vsel %vm712_vm4, %v703_v14, %v2558_v18  ;;  %v31_v14 = vld [vmem:[%s3286_s0 + $0x28] sm:$0xff] }
 0x3e9   :  { %722 = vrot.lane.b32.xlu0 %v2614_v26, %s2365_s2  ;;  %v2027_v16 = vld [vmem:[%s3286_s0 + $0xa8] sm:$0xff] }
 0x3ea   :  { %2063 = vmatmul.mubr.msk.bf16.gmra.mxu0 %vm319_vm7, %v252_v23  ;;  %v128_v20 = vadd.s32 32, %v2027_v16  ;;  %v33_v23 = vld [vmem:[%s3286_s0 + $0x38] sm:$0xff]  ;;  %v36_v16 = vld [vmem:[%s3286_s0 + $0x50] sm:$0xff] }
 0x3eb   :  { %396 = vmatprep.mubr.bf16.mxu0 %v2362_v2 }
 0x448   :  { %v716_v18 = vpop.permute.xlu1 %715 }
 0x449   :  { %v2634_v29 = vsel %vm705_vm11, %v716_v18, %v2575_v24  ;;  %v35_v18 = vld [vmem:[%s3286_s0 + $0x48] sm:$0xff] }
 0x44a   :  { %783 = vrot.lane.b32.xlu0 %v2634_v29, %s2365_s2 }
 0x44e   :  { %802 = vrot.lane.b32.xlu0 %v2085_v31, %s2365_s2 }
 0x45b   :  { %v723_v33 = vpop.permute.xlu0 %722 }
 0x45c   :  { %2083 = vmatmul.mubr.msk.bf16.vlgmr.msra.gmra.mxu1 %vm319_vm7, %v723_v33  ;;  %v39_v33 = vld [vmem:[%s3286_s0 + $0x68] sm:$0xff] }
 0x45d   :  { %828 = vmatpush1.bf16.msra.mxu1 %v2433_v7  ;;  %851 = vmatprep.mubr.bf16.mxu1 %v2362_v2 }
 0x45e   :  { %829 = vmatprep.subr.bf16.mxu1 %v2444_v10 }
 0x461   :  { %830 = vmatpush1.bf16.msra.mxu1 %v2456_v13 }
 0x462   :  { %831 = vmatprep.subr.bf16.mxu1 %v2465_v15 }
 0x465   :  { %832 = vmatpush1.bf16.msra.mxu1 %v2473_v17 }
 0x466   :  { %833 = vmatprep.subr.bf16.mxu1 %v2483_v19 }
 0x469   :  { %834 = vmatpush1.bf16.msra.mxu1 %v2495_v22 }
 0x46a   :  { %1011 = vmatprep.subr.bf16.mxu1 %v2428_v6 }
 0x4aa   :  { %v388_v21 = vpop.f32.mrf.mxu0 }
 0x4ab   :  { %v389_v34 = vadd.f32 %v388_v21, %v2550_v47  ;;  %v2035_v21 = vld [vmem:[%s3286_s0 + $0xe8] sm:$0xff] }
 0x4ac   :  { %v390_v24 = vpop.f32.mrf.mxu0 }
 0x4ad   :  { %v391_v37 = vadd.f32 %v390_v24, %v2552_v48  ;;  %v136_v24 = vadd.s32 32, %v2035_v21 }
 0x4bc   :  { %v784_v58 = vpop.permute.xlu0 %783 }
 0x4c0   :  { %v803_v63 = vpop.permute.xlu0 %802 }
 0x4c1   :  { %vm804_vm8 = vcmp.ne.s16.totalorder %v803_v63, 0  ;;  %v2026_v63 = vld [vmem:[%s3286_s0 + $0xa0] sm:$0xff] }
 0x51c   :  { %v761_v36 = vpop.f32.mrf.mxu1 }
 0x51d   :  { %v768_v38 = vadd.f32 %v761_v36, %v389_v34  ;;  %v41_v34 = vld [vmem:[%s3286_s0 + $0x78] sm:$0xff] }
 0x51e   :  { %v763_v39 = vpop.f32.mrf.mxu1 }
 0x51f   :  { %v770_v40 = vsub.f32 0.0, %v768_v38  ;;  %v769_v41 = vadd.f32 %v763_v39, %v391_v37  ;;  %v392_v37 = vpop.f32.mrf.mxu0 }
 0x520   :  { %v765_v42 = vpop.f32.mrf.mxu1  ;;  %v393_v39 = vadd.f32 %v392_v37, %v2550_v47 }
 0x521   :  { %v772_v43 = vmul.f32 1.442695, %v770_v40  ;;  %v771_v44 = vsub.f32 0.0, %v769_v41  ;;  %v394_v38 = vpop.f32.mrf.mxu0 }
 0x522   :  { %v766_v45 = vpop.f32.mrf.mxu1  ;;  %v395_v41 = vadd.f32 %v394_v38, %v2552_v48 }
 0x523   :  { %v774_v46 = vmul.f32 1.442695, %v771_v44  ;;  %2190 = vpow2.f32 %v772_v43 }
 0x525   :  { %2192 = vpow2.f32 %v774_v46 }
 0x530   :  { %v2191_v49 = vpop.eup %2190 }
 0x531   :  { %v776_v52 = vadd.f32 1.0, %v2191_v49 }
 0x532   :  { %v2193_v50 = vpop.eup %2192 }
 0x533   :  { %v777_v51 = vadd.f32 1.0, %v2193_v50 }
 0x535   :  { %2194 = vrcp.f32 %v777_v51 }
 0x536   :  { %2196 = vrcp.f32 %v776_v52 }
 0x542   :  { %v2195_v53 = vpop.eup %2194 }
 0x543   :  { %v780_v54 = vmul.f32 2.0, %v2195_v53  ;;  %v2197_v56 = vpop.eup %2196 }
 0x544   :  { %v786_v59 = vmul.f32 %v2197_v56, %v784_v58 }
 0x545   :  { %v2084_v55 = vadd.f32 -1.0, %v780_v54 }
 0x547   :  { %v787_v57 = vmul.f32 %v2197_v56, %v2084_v55 }
 0x549   :  { %789 = vrot.lane.b32.xlu1 %v787_v57, %s2365_s2 }
 0x5bb   :  { %v790_v60 = vpop.permute.xlu1 %789 }
 0x5bc   :  { %v792_v61 = vadd.f32 %v790_v60, %v786_v59 }
 0x5be   :  { %2198 = vtanh.f32 %v792_v61  ;;  %807 = vrot.lane.b32.xlu0 %v792_v61, %s2365_s2 }
 0x5cb   :  { %v2199_v62 = vpop.eup %2198 }
 0x5cc   :  { %v794_v0 = vmul.f32 %v2199_v62, %v2195_v53  ;;  %v30_v62 = vld [vmem:[%s3286_s0 + $0x20] sm:$0xff] }
 0x5ce   :  { %v795_v1 = vpack.c.bf16 %v794_v0, %v794_v0  ;;  %v127_v0 = vadd.s32 32, %v2026_v63 }
 0x5d0   :  { %v2655_v3 = vsel %vm804_vm8, %v795_v1, %v2614_v26  ;;  %v2029_v26 = vld [vmem:[%s3286_s0 + $0xb8] sm:$0xff]  ;;  %v32_v1 = vld [vmem:[%s3286_s0 + $0x30] sm:$0xff] }
 0x5d1   :  { %814 = vrot.lane.b32.xlu1 %v2655_v3, %s2365_s2  ;;  %v130_v27 = vadd.s32 32, %v2029_v26  ;;  %v38_v26 = vld [vmem:[%s3286_s0 + $0x60] sm:$0xff] }
 0x630   :  { %v808_v8 = vpop.permute.xlu0 %807 }
 0x631   :  { %v2673_v9 = vsel %vm797_vm5, %v808_v8, %v2634_v29  ;;  %v2031_v29 = vld [vmem:[%s3286_s0 + $0xc8] sm:$0xff]  ;;  %v129_v8 = vadd.s32 32, %v2028_v4 }
 0x632   :  { %875 = vrot.lane.b32.xlu1 %v2673_v9, %s2365_s2  ;;  %v132_v30 = vadd.s32 32, %v2031_v29  ;;  %v2036_v29 = vld [vmem:[%s3286_s0 + $0xf0] sm:$0xff] }
 0x636   :  { %894 = vrot.lane.b32.xlu1 %v2088_v12, %s2365_s2  ;;  %v2030_v12 = vld [vmem:[%s3286_s0 + $0xc0] sm:$0xff] }
 0x63a   :  { %58 = vperm.xlu1 %2145, %v31_v14   ;;  %v131_v14 = vadd.s32 32, %v2030_v12 }
 0x63e   :  { %155 = vperm.xlu1 %2145, %v128_v20   ;;  %v2032_v20 = vld [vmem:[%s3286_s0 + $0xd0] sm:$0xff] }
 0x642   :  { %64 = vperm.xlu1 %2145, %v33_v23   ;;  %v133_v23 = vadd.s32 32, %v2032_v20 }
 0x643   :  { %v815_v28 = vpop.permute.xlu1 %814 }
 0x644   :  { %2086 = vmatmul.mubr.msk.bf16.vlgmr.msra.gmra.mxu1 %vm319_vm7, %v815_v28 }
 0x645   :  { %1012 = vmatpush1.bf16.msra.mxu1 %v2433_v7  ;;  %1035 = vmatprep.mubr.bf16.mxu1 %v2362_v2  ;;  %v37_v7 = vld [vmem:[%s3286_s0 + $0x58] sm:$0xff] }
 0x646   :  { %161 = vperm.xlu1 %2145, %v130_v27   ;;  %1013 = vmatprep.subr.bf16.mxu1 %v2444_v10  ;;  %v2033_v10 = vld [vmem:[%s3286_s0 + $0xd8] sm:$0xff]  ;;  %v2034_v27 = vld [vmem:[%s3286_s0 + $0xe0] sm:$0xff] }
 0x647   :  { %v134_v31 = vadd.s32 32, %v2033_v10  ;;  %v135_v28 = vadd.s32 32, %v2034_v27 }
 0x649   :  { %1014 = vmatpush1.bf16.msra.mxu1 %v2456_v13 }
 0x64a   :  { %70 = vperm.xlu1 %2145, %v35_v18   ;;  %1015 = vmatprep.subr.bf16.mxu1 %v2465_v15  ;;  %v40_v18 = vld [vmem:[%s3286_s0 + $0x70] sm:$0xff] }
 0x64d   :  { %1016 = vmatpush1.bf16.msra.mxu1 %v2473_v17 }
 0x64e   :  { %167 = vperm.xlu1 %2145, %v132_v30   ;;  %1017 = vmatprep.subr.bf16.mxu1 %v2483_v19  ;;  %v137_v30 = vadd.s32 32, %v2036_v29 }
 0x651   :  { %1018 = vmatpush1.bf16.msra.mxu1 %v2495_v22 }
 0x652   :  { %76 = vperm.xlu1 %2145, %v37_v7   ;;  %1195 = vmatprep.subr.bf16.mxu1 %v2428_v6  ;;  %v2037_v6 = vld [vmem:[%s3286_s0 + $0xf8] sm:$0xff] }
 0x653   :  { %v138_v36 = vadd.s32 32, %v2037_v6 }
 0x656   :  { %173 = vperm.xlu1 %2145, %v134_v31  }
 0x65a   :  { %82 = vperm.xlu1 %2145, %v39_v33  }
 0x65e   :  { %179 = vperm.xlu1 %2145, %v136_v24  }
 0x662   :  { %88 = vperm.xlu1 %2145, %v41_v34  }
 0x666   :  { %185 = vperm.xlu1 %2145, %v138_v36  }
 0x6a4   :  { %v876_v7 = vpop.permute.xlu1 %875 }
 0x6a8   :  { %v895_v10 = vpop.permute.xlu1 %894 }
 0x6a9   :  { %vm896_vm1 = vcmp.ne.s16.totalorder %v895_v10, 0 }
 0x6b5   :  { %v59_v31 = vpop.permute.xlu1 %58 }
 0x6b6   :  { %vm95_vm12 = vcmp.eq.s32.totalorder %v2514_v25, %v59_v31 }
 0x6b9   :  { %v156_v33 = vpop.permute.xlu1 %155 }
 0x6ba   :  { %vm192_vm11 = vcmp.eq.s32.totalorder %v2514_v25, %v156_v33 }
 0x6bb   :  { %vm208_vm13 = vmor %vm95_vm12, %vm192_vm11 }
 0x6bd   :  { %v65_v21 = vpop.permute.xlu1 %64 }
 0x6be   :  { %vm97_vm4 = vcmp.eq.s32.totalorder %v2514_v25, %v65_v21 }
 0x6c1   :  { %v162_v36 = vpop.permute.xlu1 %161 }
 0x6c2   :  { %vm194_vm3 = vcmp.eq.s32.totalorder %v2514_v25, %v162_v36 }
 0x6c3   :  { %vm210_vm5 = vmor %vm97_vm4, %vm194_vm3 }
 0x6c5   :  { %v71_v37 = vpop.permute.xlu1 %70 }
 0x6c6   :  { %vm99_vm12 = vcmp.eq.s32.totalorder %v2514_v25, %v71_v37 }
 0x704   :  { %v853_v40 = vpop.f32.mrf.mxu1 }
 0x705   :  { %v860_v42 = vadd.f32 %v853_v40, %v393_v39  ;;  %v168_v39 = vpop.permute.xlu1 %167 }
 0x706   :  { %v855_v43 = vpop.f32.mrf.mxu1  ;;  %vm196_vm11 = vcmp.eq.s32.totalorder %v2514_v25, %v168_v39 }
 0x707   :  { %v862_v44 = vsub.f32 0.0, %v860_v42  ;;  %v861_v45 = vadd.f32 %v855_v43, %v395_v41 }
 0x708   :  { %v857_v46 = vpop.f32.mrf.mxu1 }
 0x709   :  { %v864_v49 = vmul.f32 1.442695, %v862_v44  ;;  %v863_v50 = vsub.f32 0.0, %v861_v45  ;;  %v2043_v44 = vsel %vm208_vm13, 1.0, %v2364_v32  ;;  %v77_v46 = vpop.permute.xlu1 %76  ;;  %vm212_vm13 = vmor %vm99_vm12, %vm196_vm11 }
 0x70a   :  { %v858_v51 = vpop.f32.mrf.mxu1  ;;  %vm101_vm3 = vcmp.eq.s32.totalorder %v2514_v25, %v77_v46 }
 0x70b   :  { %v866_v52 = vmul.f32 1.442695, %v863_v50  ;;  %2200 = vpow2.f32 %v864_v49 }
 0x70d   :  { %2202 = vpow2.f32 %v866_v52 }
 0x718   :  { %v2201_v53 = vpop.eup %2200 }
 0x719   :  { %v868_v56 = vadd.f32 1.0, %v2201_v53  ;;  %v174_v53 = vpop.permute.xlu1 %173 }
 0x71a   :  { %v2203_v54 = vpop.eup %2202 }
 0x71b   :  { %v869_v55 = vadd.f32 1.0, %v2203_v54 }
 0x71d   :  { %2204 = vrcp.f32 %v869_v55 }
 0x71e   :  { %2206 = vrcp.f32 %v868_v56 }
 0x72a   :  { %v2205_v57 = vpop.eup %2204 }
 0x72b   :  { %v872_v58 = vmul.f32 2.0, %v2205_v57  ;;  %v2207_v60 = vpop.eup %2206 }
 0x72c   :  { %v878_v24 = vmul.f32 %v2207_v60, %v876_v7  ;;  %v2369_v7 = vmov 11  }
 0x72d   :  { %v2087_v59 = vadd.f32 -1.0, %v872_v58  ;;  %v2820_v10 = vsel %vm611_vm2, 4, %v2369_v7 }
 0x72f   :  { %v879_v61 = vmul.f32 %v2207_v60, %v2087_v59  ;;  %v2047_v59 = vsel %vm212_vm13, 1.0, %v2364_v32 }
 0x731   :  { %881 = vrot.lane.b32.xlu0 %v879_v61, %s2365_s2 }
 0x735   :  { %55 = vperm.xlu0 %2144, %v30_v62  }
 0x739   :  { %152 = vperm.xlu0 %2144, %v127_v0  }
 0x73d   :  { %61 = vperm.xlu0 %2144, %v32_v1  }
 0x741   :  { %158 = vperm.xlu0 %2144, %v129_v8  }
 0x745   :  { %67 = vperm.xlu0 %2144, %v34_v11  }
 0x749   :  { %164 = vperm.xlu0 %2144, %v131_v14  }
 0x74d   :  { %73 = vperm.xlu0 %2144, %v36_v16  }
 0x751   :  { %170 = vperm.xlu0 %2144, %v133_v23  }
 0x755   :  { %79 = vperm.xlu0 %2144, %v38_v26  }
 0x759   :  { %176 = vperm.xlu0 %2144, %v135_v28  }
 0x75d   :  { %85 = vperm.xlu0 %2144, %v40_v18  }
 0x761   :  { %182 = vperm.xlu0 %2144, %v137_v30  }
 0x7a3   :  { %v882_v34 = vpop.permute.xlu0 %881 }
 0x7a4   :  { %v884_v6 = vadd.f32 %v882_v34, %v878_v24  ;;  %v2842_v34 = vld [vmem:[%s3289_s3 + $0x30] ss:$8 sps:$4 sm:$0xff]  }
 0x7a6   :  { %2208 = vtanh.f32 %v884_v6  ;;  %899 = vrot.lane.b32.xlu1 %v884_v6, %s2365_s2 }
 0x7b0   :  { %v56_v38 = vpop.permute.xlu0 %55 }
 0x7b1   :  { %vm94_vm14 = vcmp.eq.s32.totalorder %v2514_v25, %v56_v38 }
 0x7b3   :  { %v2209_v40 = vpop.eup %2208 }
 0x7b4   :  { %v153_v41 = vpop.permute.xlu0 %152  ;;  %v886_v42 = vmul.f32 %v2209_v40, %v2205_v57  ;;  %v83_v57 = vpop.permute.xlu1 %82 }
 0x7b5   :  { %vm191_vm15 = vcmp.eq.s32.totalorder %v2514_v25, %v153_v41  ;;  %vm103_vm11 = vcmp.eq.s32.totalorder %v2514_v25, %v83_v57 }
 0x7b6   :  { %vm207_vm0 = vmor %vm94_vm14, %vm191_vm15  ;;  %v887_v43 = vpack.c.bf16 %v886_v42, %v886_v42 }
 0x7b7   :  { %v2042_v45 = vsel %vm207_vm0, 1.0, %v2364_v32 }
 0x7b8   :  { %v253_v49 = vpack.c.bf16 %v2043_v44, %v2042_v45  ;;  %v62_v50 = vpop.permute.xlu0 %61  ;;  %v2772_v51 = vsel %vm896_vm1, %v887_v43, %v2655_v3  ;;  %v2045_v3 = vsel %vm210_vm5, 1.0, %v2364_v32  ;;  %vm198_vm1 = vcmp.eq.s32.totalorder %v2514_v25, %v174_v53  ;;  %v180_v63 = vpop.permute.xlu1 %179 }
 0x7b9   :  { %906 = vrot.lane.b32.xlu0 %v2772_v51, %s2365_s2  ;;  %vm96_vm6 = vcmp.eq.s32.totalorder %v2514_v25, %v62_v50  ;;  %vm214_vm4 = vmor %vm101_vm3, %vm198_vm1 }
 0x7ba   :  { %2064 = vmatmul.mubr.msk.bf16.gmra.mxu0 %vm319_vm7, %v253_v49  ;;  %v2049_v1 = vsel %vm214_vm4, 1.0, %v2364_v32 }
 0x7bb   :  { %406 = vmatprep.mubr.bf16.mxu0 %v2362_v2 }
 0x7bc   :  { %v159_v52 = vpop.permute.xlu0 %158  ;;  %v89_v8 = vpop.permute.xlu1 %88 }
 0x7bd   :  { %vm193_vm8 = vcmp.eq.s32.totalorder %v2514_v25, %v159_v52  ;;  %vm105_vm1 = vcmp.eq.s32.totalorder %v2514_v25, %v89_v8 }
 0x7be   :  { %vm209_vm10 = vmor %vm96_vm6, %vm193_vm8 }
 0x7bf   :  { %v2044_v54 = vsel %vm209_vm10, 1.0, %v2364_v32  ;;  %vm200_vm10 = vcmp.eq.s32.totalorder %v2514_v25, %v180_v63 }
 0x7c0   :  { %v254_v55 = vpack.c.bf16 %v2045_v3, %v2044_v54  ;;  %v68_v56 = vpop.permute.xlu0 %67  ;;  %vm216_vm12 = vmor %vm103_vm11, %vm200_vm10  ;;  %v186_v16 = vpop.permute.xlu1 %185 }
 0x7c1   :  { %vm98_vm14 = vcmp.eq.s32.totalorder %v2514_v25, %v68_v56  ;;  %v2051_v20 = vsel %vm216_vm12, 1.0, %v2364_v32 }
 0x7c2   :  { %2065 = vmatmul.mubr.msk.bf16.gmra.mxu0 %vm319_vm7, %v254_v55 }
 0x7c3   :  { %416 = vmatprep.mubr.bf16.mxu0 %v2362_v2 }
 0x7c4   :  { %v165_v58 = vpop.permute.xlu0 %164 }
 0x7c5   :  { %vm195_vm15 = vcmp.eq.s32.totalorder %v2514_v25, %v165_v58 }
 0x7c6   :  { %vm211_vm0 = vmor %vm98_vm14, %vm195_vm15 }
 0x7c7   :  { %v2046_v60 = vsel %vm211_vm0, 1.0, %v2364_v32  ;;  %vm202_vm0 = vcmp.eq.s32.totalorder %v2514_v25, %v186_v16 }
 0x7c8   :  { %v255_v61 = vpack.c.bf16 %v2047_v59, %v2046_v60  ;;  %v74_v62 = vpop.permute.xlu0 %73  ;;  %vm218_vm3 = vmor %vm105_vm1, %vm202_vm0 }
 0x7c9   :  { %vm100_vm5 = vcmp.eq.s32.totalorder %v2514_v25, %v74_v62  ;;  %v2053_v18 = vsel %vm218_vm3, 1.0, %v2364_v32 }
 0x7ca   :  { %2066 = vmatmul.mubr.msk.bf16.gmra.mxu0 %vm319_vm7, %v255_v61 }
 0x7cb   :  { %426 = vmatprep.mubr.bf16.mxu0 %v2362_v2 }
 0x7cc   :  { %v171_v0 = vpop.permute.xlu0 %170 }
 0x7cd   :  { %vm197_vm6 = vcmp.eq.s32.totalorder %v2514_v25, %v171_v0 }
 0x7ce   :  { %vm213_vm8 = vmor %vm100_vm5, %vm197_vm6 }
 0x7cf   :  { %v2048_v4 = vsel %vm213_vm8, 1.0, %v2364_v32  ;;  %vm981_vm8 = vcmp.gt.s32.totalorder %v2527_v35, %v2820_v10  ;;  %v2943_v10 = vld [vmem:[%s3289_s3 + $0x20] ss:$8 sps:$4 sm:$0xff]  }
 0x7d0   :  { %v256_v11 = vpack.c.bf16 %v2049_v1, %v2048_v4  ;;  %v80_v12 = vpop.permute.xlu0 %79  ;;  %vm982_vm10 = vmpackc.low %vm981_vm8, %vm981_vm8 }
 0x7d1   :  { %vm102_vm13 = vcmp.eq.s32.totalorder %v2514_v25, %v80_v12  ;;  %v983_v33 = vsel %vm982_vm10, 65537, %v2362_v2 }
 0x7d2   :  { %2067 = vmatmul.mubr.msk.bf16.gmra.mxu0 %vm319_vm7, %v256_v11  ;;  %v2091_v21 = vcombine.low %v983_v33, %v983_v33 }
 0x7d3   :  { %436 = vmatprep.mubr.bf16.mxu0 %v2362_v2 }
 0x7d4   :  { %v177_v14 = vpop.permute.xlu0 %176 }
 0x7d5   :  { %vm199_vm14 = vcmp.eq.s32.totalorder %v2514_v25, %v177_v14 }
 0x7d6   :  { %vm215_vm15 = vmor %vm102_vm13, %vm199_vm14 }
 0x7d7   :  { %v2050_v23 = vsel %vm215_vm15, 1.0, %v2364_v32 }
 0x7d8   :  { %v257_v26 = vpack.c.bf16 %v2051_v20, %v2050_v23  ;;  %v86_v27 = vpop.permute.xlu0 %85 }
 0x7d9   :  { %vm104_vm4 = vcmp.eq.s32.totalorder %v2514_v25, %v86_v27 }
 0x7da   :  { %2068 = vmatmul.mubr.msk.bf16.gmra.mxu0 %vm319_vm7, %v257_v26 }
 0x7db   :  { %446 = vmatprep.mubr.bf16.mxu0 %v2362_v2 }
 0x7dc   :  { %v183_v28 = vpop.permute.xlu0 %182 }
 0x7dd   :  { %vm201_vm5 = vcmp.eq.s32.totalorder %v2514_v25, %v183_v28 }
 0x7de   :  { %vm217_vm6 = vmor %vm104_vm4, %vm201_vm5 }
 0x7df   :  { %v2052_v29 = vsel %vm217_vm6, 1.0, %v2364_v32 }
 0x7e0   :  { %v258_v30 = vpack.c.bf16 %v2053_v18, %v2052_v29 }
 0x7e2   :  { %2069 = vmatmul.mubr.msk.bf16.gmra.mxu0 %vm319_vm7, %v258_v30 }
 0x7e3   :  { %943 = vmatprep.mubr.bf16.mxu0 %v2362_v2 }
 0x818   :  { %v900_v31 = vpop.permute.xlu1 %899 }
 0x819   :  { %v2832_v32 = vsel %vm889_vm9, %v900_v31, %v2673_v9  ;;  %v2860_v9 = vld [vmem:[%s3289_s3 + $0x34] ss:$8 sps:$4 sm:$0xff]  }
 0x81a   :  { %967 = vrot.lane.b32.xlu0 %v2832_v32, %s2365_s2 }
 0x81e   :  { %986 = vrot.lane.b32.xlu0 %v2091_v21, %s2365_s2 }
 0x82b   :  { %v907_v24 = vpop.permute.xlu0 %906 }
 0x82c   :  { %2089 = vmatmul.mubr.msk.bf16.vlgmr.msra.gmra.mxu0 %vm319_vm7, %v907_v24 }
 0x82d   :  { %1104 = vmatpush1.bf16.msra.mxu0 %v2842_v34  ;;  %1127 = vmatprep.mubr.bf16.mxu0 %v2362_v2 }
 0x82e   :  { %1105 = vmatprep.subr.bf16.mxu0 %v2849_v5 }
 0x831   :  { %1106 = vmatpush1.bf16.msra.mxu0 %v2456_v13 }
 0x832   :  { %1107 = vmatprep.subr.bf16.mxu0 %v2465_v15 }
 0x835   :  { %1108 = vmatpush1.bf16.msra.mxu0 %v2473_v17 }
 0x836   :  { %1109 = vmatprep.subr.bf16.mxu0 %v2483_v19 }
 0x839   :  { %1110 = vmatpush1.bf16.msra.mxu0 %v2495_v22 }
 0x83a   :  { %1287 = vmatprep.subr.bf16.mxu0 %v2860_v9 }
 0x87a   :  { %v398_v6 = vpop.f32.mrf.mxu0 }
 0x87b   :  { %v399_v56 = vadd.f32 %v398_v6, %v2550_v47 }
 0x87c   :  { %v400_v36 = vpop.f32.mrf.mxu0 }
 0x87d   :  { %v401_v58 = vadd.f32 %v400_v36, %v2552_v48  ;;  %v2370_v36 = vmov 10  }
 0x87e   :  { %v2863_v37 = vpop.f32.mrf.mxu0 }
 0x880   :  { %v2865_v13 = vpop.f32.mrf.mxu0 }
 0x882   :  { %v2867_v15 = vpop.f32.mrf.mxu0 }
 0x884   :  { %v2869_v17 = vpop.f32.mrf.mxu0 }
 0x886   :  { %v2871_v19 = vpop.f32.mrf.mxu0 }
 0x888   :  { %v2873_v22 = vpop.f32.mrf.mxu0 }
 0x88a   :  { %v2875_v38 = vpop.f32.mrf.mxu0 }
 0x88c   :  { %v2877_v39 = vpop.f32.mrf.mxu0  ;;  %v968_v18 = vpop.permute.xlu0 %967 }
 0x88e   :  { %v2879_v40 = vpop.f32.mrf.mxu0 }
 0x890   :  { %v2881_v41 = vpop.f32.mrf.mxu0  ;;  %v987_v33 = vpop.permute.xlu0 %986 }
 0x891   :  { %vm988_vm9 = vcmp.ne.s16.totalorder %v987_v33, 0 }
 0x892   :  { %v2883_v42 = vpop.f32.mrf.mxu0 }
 0x894   :  { %v2885_v43 = vpop.f32.mrf.mxu0 }
 0x896   :  { %v2887_v44 = vpop.f32.mrf.mxu0 }
 0x898   :  { %v2889_v45 = vpop.f32.mrf.mxu0 }
 0x89a   :  { %v2891_v46 = vpop.f32.mrf.mxu0 }
 0x89c   :  { %v2893_v49 = vpop.f32.mrf.mxu0 }
 0x89e   :  { %v2895_v50 = vpop.f32.mrf.mxu0 }
 0x8a0   :  { %v2897_v52 = vpop.f32.mrf.mxu0 }
 0x8a2   :  { %v2899_v53 = vpop.f32.mrf.mxu0 }
 0x8a4   :  { %v2901_v3 = vpop.f32.mrf.mxu0 }
 0x8a6   :  { %v2903_v54 = vpop.f32.mrf.mxu0 }
 0x8a7   :  { %v453_v25 = vadd.f32 %v2903_v54, %v2550_v47 }
 0x8a8   :  { %v2905_v55 = vpop.f32.mrf.mxu0 }
 0x8ec   :  { %v945_v57 = vpop.f32.mrf.mxu0 }
 0x8ed   :  { %v952_v59 = vadd.f32 %v945_v57, %v399_v56  ;;  %v2918_v56 = vsel %vm611_vm2, 5, %v2370_v36 }
 0x8ee   :  { %v947_v60 = vpop.f32.mrf.mxu0  ;;  %vm1073_vm11 = vcmp.gt.s32.totalorder %v2527_v35, %v2918_v56  ;;  %v409_v56 = vadd.f32 %v2867_v15, %v2550_v47 }
 0x8ef   :  { %v954_v61 = vsub.f32 0.0, %v952_v59  ;;  %v953_v62 = vadd.f32 %v947_v60, %v401_v58  ;;  %vm1074_vm12 = vmpackc.low %vm1073_vm11, %vm1073_vm11 }
 0x8f0   :  { %v949_v63 = vpop.f32.mrf.mxu0  ;;  %v1075_v58 = vsel %vm1074_vm12, 65537, %v2362_v2 }
 0x8f1   :  { %v956_v0 = vmul.f32 1.442695, %v954_v61  ;;  %v955_v1 = vsub.f32 0.0, %v953_v62  ;;  %v2094_v59 = vcombine.low %v1075_v58, %v1075_v58  ;;  %v2955_v61 = vld [vmem:[%s3289_s3 + $0x10] ss:$8 sps:$4 sm:$0xff]  }
 0x8f2   :  { %v950_v4 = vpop.f32.mrf.mxu0  ;;  %v2961_v62 = vld [vmem:[%s3289_s3 + $0x4] ss:$8 sps:$4 sm:$0xff]   ;;  %v2967_v63 = vld [vmem:[%s3289_s3] ss:$8 sps:$4 sm:$0xff]  }
 0x8f3   :  { %v958_v8 = vmul.f32 1.442695, %v955_v1  ;;  %2210 = vpow2.f32 %v956_v0  ;;  %v403_v0 = vadd.f32 %v2863_v37, %v2550_v47  ;;  %v405_v4 = vadd.f32 %v2865_v13, %v2552_v48 }
 0x8f5   :  { %2212 = vpow2.f32 %v958_v8 }
 0x900   :  { %v2211_v11 = vpop.eup %2210 }
 0x901   :  { %v960_v16 = vadd.f32 1.0, %v2211_v11 }
 0x902   :  { %v2213_v12 = vpop.eup %2212 }
 0x903   :  { %v961_v14 = vadd.f32 1.0, %v2213_v12 }
 0x905   :  { %2214 = vrcp.f32 %v961_v14 }
 0x906   :  { %2216 = vrcp.f32 %v960_v16 }
 0x912   :  { %v2215_v20 = vpop.eup %2214 }
 0x913   :  { %v964_v23 = vmul.f32 2.0, %v2215_v20  ;;  %v2217_v27 = vpop.eup %2216 }
 0x914   :  { %v970_v29 = vmul.f32 %v2217_v27, %v968_v18 }
 0x915   :  { %v2090_v26 = vadd.f32 -1.0, %v964_v23 }
 0x917   :  { %v971_v28 = vmul.f32 %v2217_v27, %v2090_v26 }
 0x919   :  { %973 = vrot.lane.b32.xlu1 %v971_v28, %s2365_s2 }
 0x98b   :  { %v974_v30 = vpop.permute.xlu1 %973 }
 0x98c   :  { %v976_v7 = vadd.f32 %v974_v30, %v970_v29 }
 0x98e   :  { %2218 = vtanh.f32 %v976_v7  ;;  %991 = vrot.lane.b32.xlu0 %v976_v7, %s2365_s2 }
 0x99b   :  { %v2219_v31 = vpop.eup %2218 }
 0x99c   :  { %v978_v21 = vmul.f32 %v2219_v31, %v2215_v20 }
 0x99e   :  { %v979_v24 = vpack.c.bf16 %v978_v21, %v978_v21 }
 0x9a0   :  { %v2912_v6 = vsel %vm988_vm9, %v979_v24, %v2772_v51 }
 0x9a1   :  { %998 = vrot.lane.b32.xlu1 %v2912_v6, %s2365_s2 }
 0xa00   :  { %v992_v57 = vpop.permute.xlu0 %991 }
 0xa01   :  { %v2930_v51 = vsel %vm981_vm8, %v992_v57, %v2832_v32  ;;  %v2949_v32 = vld [vmem:[%s3289_s3 + $0x14] ss:$8 sps:$4 sm:$0xff]  }
 0xa02   :  { %1059 = vrot.lane.b32.xlu1 %v2930_v51, %s2365_s2 }
 0xa06   :  { %1078 = vrot.lane.b32.xlu1 %v2094_v59, %s2365_s2 }
 0xa13   :  { %v999_v60 = vpop.permute.xlu1 %998 }
 0xa14   :  { %2092 = vmatmul.mubr.msk.bf16.vlgmr.msra.gmra.mxu1 %vm319_vm7, %v999_v60 }
 0xa15   :  { %1196 = vmatpush1.bf16.msra.mxu1 %v2842_v34  ;;  %1219 = vmatprep.mubr.bf16.mxu1 %v2362_v2 }
 0xa16   :  { %1197 = vmatprep.subr.bf16.mxu1 %v2849_v5 }
 0xa19   :  { %1198 = vmatpush1.bf16.msra.mxu1 %v2943_v10 }
 0xa1a   :  { %1199 = vmatprep.subr.bf16.mxu1 %v2949_v32 }
 0xa1d   :  { %1200 = vmatpush1.bf16.msra.mxu1 %v2955_v61 }
 0xa1e   :  { %1201 = vmatprep.subr.bf16.mxu1 %v2961_v62 }
 0xa21   :  { %1202 = vmatpush1.bf16.msra.mxu1 %v2967_v63 }
 0xa22   :  { %1379 = vmatprep.subr.bf16.mxu1 %v2860_v9 }
 0xa74   :  { %v1060_v21 = vpop.permute.xlu1 %1059 }
 0xa78   :  { %v1079_v59 = vpop.permute.xlu1 %1078 }
 0xa79   :  { %vm1080_vm13 = vcmp.ne.s16.totalorder %v1079_v59, 0 }
 0xad4   :  { %v1037_v1 = vpop.f32.mrf.mxu1 }
 0xad5   :  { %v1044_v8 = vadd.f32 %v1037_v1, %v403_v0 }
 0xad6   :  { %v1039_v11 = vpop.f32.mrf.mxu1 }
 0xad7   :  { %v1046_v12 = vsub.f32 0.0, %v1044_v8  ;;  %v1045_v14 = vadd.f32 %v1039_v11, %v405_v4  ;;  %v2371_v4 = vmov 9  }
 0xad8   :  { %v1041_v16 = vpop.f32.mrf.mxu1  ;;  %v2981_v8 = vsel %vm611_vm2, 6, %v2371_v4 }
 0xad9   :  { %v1048_v20 = vmul.f32 1.442695, %v1046_v12  ;;  %v1047_v23 = vsub.f32 0.0, %v1045_v14  ;;  %vm1165_vm14 = vcmp.gt.s32.totalorder %v2527_v35, %v2981_v8  ;;  %v413_v8 = vadd.f32 %v2871_v19, %v2550_v47 }
 0xada   :  { %v1042_v26 = vpop.f32.mrf.mxu1  ;;  %vm1166_vm15 = vmpackc.low %vm1165_vm14, %vm1165_vm14 }
 0xadb   :  { %v1050_v27 = vmul.f32 1.442695, %v1047_v23  ;;  %2220 = vpow2.f32 %v1048_v20  ;;  %v1167_v12 = vsel %vm1166_vm15, 65537, %v2362_v2  ;;  %v411_v20 = vadd.f32 %v2869_v17, %v2552_v48 }
 0xadc   :  { %v2097_v14 = vcombine.low %v1167_v12, %v1167_v12 }
 0xadd   :  { %2222 = vpow2.f32 %v1050_v27 }
 0xae8   :  { %v2221_v28 = vpop.eup %2220 }
 0xae9   :  { %v1052_v30 = vadd.f32 1.0, %v2221_v28 }
 0xaea   :  { %v2223_v18 = vpop.eup %2222 }
 0xaeb   :  { %v1053_v29 = vadd.f32 1.0, %v2223_v18 }
 0xaed   :  { %2224 = vrcp.f32 %v1053_v29 }
 0xaee   :  { %2226 = vrcp.f32 %v1052_v30 }
 0xafa   :  { %v2225_v37 = vpop.eup %2224 }
 0xafb   :  { %v1056_v7 = vmul.f32 2.0, %v2225_v37  ;;  %v2227_v31 = vpop.eup %2226 }
 0xafc   :  { %v1062_v24 = vmul.f32 %v2227_v31, %v1060_v21 }
 0xafd   :  { %v2093_v13 = vadd.f32 -1.0, %v1056_v7 }
 0xaff   :  { %v1063_v33 = vmul.f32 %v2227_v31, %v2093_v13 }
 0xb01   :  { %1065 = vrot.lane.b32.xlu0 %v1063_v33, %s2365_s2 }
 0xb73   :  { %v1066_v36 = vpop.permute.xlu0 %1065 }
 0xb74   :  { %v1068_v57 = vadd.f32 %v1066_v36, %v1062_v24 }
 0xb76   :  { %2228 = vtanh.f32 %v1068_v57  ;;  %1083 = vrot.lane.b32.xlu1 %v1068_v57, %s2365_s2 }
 0xb83   :  { %v2229_v58 = vpop.eup %2228 }
 0xb84   :  { %v1070_v60 = vmul.f32 %v2229_v58, %v2225_v37 }
 0xb86   :  { %v1071_v0 = vpack.c.bf16 %v1070_v60, %v1070_v60 }
 0xb88   :  { %v1081_v1 = vsel %vm1080_vm13, %v1071_v0, %v2912_v6 }
 0xb89   :  { %1090 = vrot.lane.b32.xlu0 %v1081_v1, %s2365_s2 }
 0xbe8   :  { %v1084_v11 = vpop.permute.xlu1 %1083 }
 0xbe9   :  { %v1086_v6 = vsel %vm1073_vm11, %v1084_v11, %v2930_v51 }
 0xbea   :  { %1151 = vrot.lane.b32.xlu0 %v1086_v6, %s2365_s2 }
 0xbee   :  { %1170 = vrot.lane.b32.xlu0 %v2097_v14, %s2365_s2 }
 0xbfb   :  { %v1091_v16 = vpop.permute.xlu0 %1090 }
 0xbfc   :  { %2095 = vmatmul.mubr.msk.bf16.vlgmr.msra.gmra.mxu0 %vm319_vm7, %v1091_v16 }
 0xbfd   :  { %1288 = vmatpush1.bf16.msra.mxu0 %v2842_v34  ;;  %1311 = vmatprep.mubr.bf16.mxu0 %v2362_v2 }
 0xbfe   :  { %1289 = vmatprep.subr.bf16.mxu0 %v2849_v5 }
 0xc01   :  { %1290 = vmatpush1.bf16.msra.mxu0 %v2943_v10 }
 0xc02   :  { %1291 = vmatprep.subr.bf16.mxu0 %v2949_v32 }
 0xc05   :  { %1292 = vmatpush1.bf16.msra.mxu0 %v2955_v61 }
 0xc06   :  { %1293 = vmatprep.subr.bf16.mxu0 %v2961_v62 }
 0xc09   :  { %1294 = vmatpush1.bf16.msra.mxu0 %v2967_v63 }
 0xc0a   :  { %1471 = vmatprep.subr.bf16.mxu0 %v2860_v9 }
 0xc5c   :  { %v1152_v58 = vpop.permute.xlu0 %1151 }
 0xc60   :  { %v1171_v11 = vpop.permute.xlu0 %1170 }
 0xc61   :  { %vm1172_vm0 = vcmp.ne.s16.totalorder %v1171_v11, 0 }
 0xcbc   :  { %v1129_v51 = vpop.f32.mrf.mxu0 }
 0xcbd   :  { %v1136_v23 = vadd.f32 %v1129_v51, %v409_v56  ;;  %v2372_v56 = vmov 8  }
 0xcbe   :  { %v1131_v26 = vpop.f32.mrf.mxu0  ;;  %v3015_v51 = vsel %vm611_vm2, 7, %v2372_v56 }
 0xcbf   :  { %v1138_v27 = vsub.f32 0.0, %v1136_v23  ;;  %v1137_v28 = vadd.f32 %v1131_v26, %v411_v20  ;;  %vm1257_vm1 = vcmp.gt.s32.totalorder %v2527_v35, %v3015_v51  ;;  %v419_v51 = vadd.f32 %v2875_v38, %v2550_v47 }
 0xcc0   :  { %v1133_v18 = vpop.f32.mrf.mxu0  ;;  %vm1258_vm3 = vmpackc.low %vm1257_vm1, %vm1257_vm1 }
 0xcc1   :  { %v1140_v29 = vmul.f32 1.442695, %v1138_v27  ;;  %v1139_v30 = vsub.f32 0.0, %v1137_v28  ;;  %v1259_v23 = vsel %vm1258_vm3, 65537, %v2362_v2  ;;  %v415_v28 = vadd.f32 %v2873_v22, %v2552_v48 }
 0xcc2   :  { %v1134_v37 = vpop.f32.mrf.mxu0  ;;  %v2100_v26 = vcombine.low %v1259_v23, %v1259_v23 }
 0xcc3   :  { %v1142_v7 = vmul.f32 1.442695, %v1139_v30  ;;  %2230 = vpow2.f32 %v1140_v29 }
 0xcc5   :  { %2232 = vpow2.f32 %v1142_v7 }
 0xcd0   :  { %v2231_v13 = vpop.eup %2230 }
 0xcd1   :  { %v1144_v21 = vadd.f32 1.0, %v2231_v13 }
 0xcd2   :  { %v2233_v31 = vpop.eup %2232 }
 0xcd3   :  { %v1145_v33 = vadd.f32 1.0, %v2233_v31 }
 0xcd5   :  { %2234 = vrcp.f32 %v1145_v33 }
 0xcd6   :  { %2236 = vrcp.f32 %v1144_v21 }
 0xce2   :  { %v2235_v15 = vpop.eup %2234 }
 0xce3   :  { %v1148_v24 = vmul.f32 2.0, %v2235_v15  ;;  %v2237_v36 = vpop.eup %2236 }
 0xce4   :  { %v1154_v59 = vmul.f32 %v2237_v36, %v1152_v58 }
 0xce5   :  { %v2096_v17 = vadd.f32 -1.0, %v1148_v24 }
 0xce7   :  { %v1155_v57 = vmul.f32 %v2237_v36, %v2096_v17 }
 0xce9   :  { %1157 = vrot.lane.b32.xlu1 %v1155_v57, %s2365_s2 }
 0xd5b   :  { %v1158_v60 = vpop.permute.xlu1 %1157 }
 0xd5c   :  { %v1160_v0 = vadd.f32 %v1158_v60, %v1154_v59 }
 0xd5e   :  { %2238 = vtanh.f32 %v1160_v0  ;;  %1175 = vrot.lane.b32.xlu0 %v1160_v0, %s2365_s2 }
 0xd6b   :  { %v2239_v4 = vpop.eup %2238 }
 0xd6c   :  { %v1162_v12 = vmul.f32 %v2239_v4, %v2235_v15 }
 0xd6e   :  { %v1163_v14 = vpack.c.bf16 %v1162_v12, %v1162_v12 }
 0xd70   :  { %v1173_v16 = vsel %vm1172_vm0, %v1163_v14, %v1081_v1 }
 0xd71   :  { %1182 = vrot.lane.b32.xlu1 %v1173_v16, %s2365_s2 }
 0xdd0   :  { %v1176_v20 = vpop.permute.xlu0 %1175 }
 0xdd1   :  { %v1178_v1 = vsel %vm1165_vm14, %v1176_v20, %v1086_v6 }
 0xdd2   :  { %1243 = vrot.lane.b32.xlu1 %v1178_v1, %s2365_s2 }
 0xdd6   :  { %1262 = vrot.lane.b32.xlu1 %v2100_v26, %s2365_s2  ;;  %v2373_v26 = vmov 7  }
 0xde3   :  { %v1183_v27 = vpop.permute.xlu1 %1182 }
 0xde4   :  { %2098 = vmatmul.mubr.msk.bf16.vlgmr.msra.gmra.mxu1 %vm319_vm7, %v1183_v27  ;;  %v3048_v27 = vsel %vm611_vm2, 8, %v2373_v26 }
 0xde5   :  { %1380 = vmatpush1.bf16.msra.mxu1 %v2842_v34  ;;  %1403 = vmatprep.mubr.bf16.mxu1 %v2362_v2  ;;  %vm1349_vm5 = vcmp.gt.s32.totalorder %v2527_v35, %v3048_v27  ;;  %v423_v27 = vadd.f32 %v2879_v40, %v2550_v47 }
 0xde6   :  { %1381 = vmatprep.subr.bf16.mxu1 %v2849_v5  ;;  %vm1350_vm6 = vmpackc.low %vm1349_vm5, %vm1349_vm5 }
 0xde9   :  { %1382 = vmatpush1.bf16.msra.mxu1 %v2943_v10 }
 0xdea   :  { %1383 = vmatprep.subr.bf16.mxu1 %v2949_v32 }
 0xded   :  { %1384 = vmatpush1.bf16.msra.mxu1 %v2955_v61 }
 0xdee   :  { %1385 = vmatprep.subr.bf16.mxu1 %v2961_v62 }
 0xdf1   :  { %1386 = vmatpush1.bf16.msra.mxu1 %v2967_v63 }
 0xdf2   :  { %1563 = vmatprep.subr.bf16.mxu1 %v2860_v9 }
 0xe44   :  { %v1244_v60 = vpop.permute.xlu1 %1243 }
 0xe48   :  { %v1263_v14 = vpop.permute.xlu1 %1262 }
 0xe49   :  { %vm1264_vm4 = vcmp.ne.s16.totalorder %v1263_v14, 0 }
 0xea4   :  { %v1221_v6 = vpop.f32.mrf.mxu1 }
 0xea5   :  { %v1228_v18 = vadd.f32 %v1221_v6, %v413_v8  ;;  %v1351_v6 = vsel %vm1350_vm6, 65537, %v2362_v2 }
 0xea6   :  { %v1223_v29 = vpop.f32.mrf.mxu1 }
 0xea7   :  { %v1230_v30 = vsub.f32 0.0, %v1228_v18  ;;  %v1229_v37 = vadd.f32 %v1223_v29, %v415_v28  ;;  %v2103_v28 = vcombine.low %v1351_v6, %v1351_v6  ;;  %v421_v29 = vadd.f32 %v2877_v39, %v2552_v48 }
 0xea8   :  { %v1225_v7 = vpop.f32.mrf.mxu1 }
 0xea9   :  { %v1232_v13 = vmul.f32 1.442695, %v1230_v30  ;;  %v1231_v31 = vsub.f32 0.0, %v1229_v37 }
 0xeaa   :  { %v1226_v33 = vpop.f32.mrf.mxu1 }
 0xeab   :  { %v1234_v21 = vmul.f32 1.442695, %v1231_v31  ;;  %2240 = vpow2.f32 %v1232_v13 }
 0xead   :  { %2242 = vpow2.f32 %v1234_v21 }
 0xeb8   :  { %v2241_v15 = vpop.eup %2240 }
 0xeb9   :  { %v1236_v36 = vadd.f32 1.0, %v2241_v15 }
 0xeba   :  { %v2243_v24 = vpop.eup %2242 }
 0xebb   :  { %v1237_v17 = vadd.f32 1.0, %v2243_v24 }
 0xebd   :  { %2244 = vrcp.f32 %v1237_v17 }
 0xebe   :  { %2246 = vrcp.f32 %v1236_v36 }
 0xeca   :  { %v2245_v19 = vpop.eup %2244 }
 0xecb   :  { %v1240_v57 = vmul.f32 2.0, %v2245_v19  ;;  %v2247_v58 = vpop.eup %2246 }
 0xecc   :  { %v1246_v0 = vmul.f32 %v2247_v58, %v1244_v60 }
 0xecd   :  { %v2099_v22 = vadd.f32 -1.0, %v1240_v57 }
 0xecf   :  { %v1247_v59 = vmul.f32 %v2247_v58, %v2099_v22 }
 0xed1   :  { %1249 = vrot.lane.b32.xlu0 %v1247_v59, %s2365_s2 }
 0xf43   :  { %v1250_v4 = vpop.permute.xlu0 %1249 }
 0xf44   :  { %v1252_v11 = vadd.f32 %v1250_v4, %v1246_v0 }
 0xf46   :  { %2248 = vtanh.f32 %v1252_v11  ;;  %1267 = vrot.lane.b32.xlu1 %v1252_v11, %s2365_s2 }
 0xf53   :  { %v2249_v12 = vpop.eup %2248 }
 0xf54   :  { %v1254_v56 = vmul.f32 %v2249_v12, %v2245_v19 }
 0xf56   :  { %v1255_v20 = vpack.c.bf16 %v1254_v56, %v1254_v56 }
 0xf58   :  { %v1265_v23 = vsel %vm1264_vm4, %v1255_v20, %v1173_v16 }
 0xf59   :  { %1274 = vrot.lane.b32.xlu0 %v1265_v23, %s2365_s2 }
 0xfb8   :  { %v1268_v8 = vpop.permute.xlu1 %1267 }
 0xfb9   :  { %v1270_v16 = vsel %vm1257_vm1, %v1268_v8, %v1178_v1  ;;  %v2374_v8 = vmov 6  }
 0xfba   :  { %1335 = vrot.lane.b32.xlu0 %v1270_v16, %s2365_s2  ;;  %v3081_v6 = vsel %vm611_vm2, 9, %v2374_v8 }
 0xfbb   :  { %vm1441_vm10 = vcmp.gt.s32.totalorder %v2527_v35, %v3081_v6  ;;  %v429_v6 = vadd.f32 %v2883_v42, %v2550_v47 }
 0xfbc   :  { %vm1442_vm9 = vmpackc.low %vm1441_vm10, %vm1441_vm10 }
 0xfbe   :  { %1354 = vrot.lane.b32.xlu0 %v2103_v28, %s2365_s2 }
 0xfcb   :  { %v1275_v18 = vpop.permute.xlu0 %1274 }
 0xfcc   :  { %2101 = vmatmul.mubr.msk.bf16.vlgmr.msra.gmra.mxu0 %vm319_vm7, %v1275_v18  ;;  %v1443_v18 = vsel %vm1442_vm9, 65537, %v2362_v2 }
 0xfcd   :  { %1472 = vmatpush1.bf16.msra.mxu0 %v2842_v34  ;;  %1495 = vmatprep.mubr.bf16.mxu0 %v2362_v2 }
 0xfce   :  { %1473 = vmatprep.subr.bf16.mxu0 %v2849_v5 }
 0xfd1   :  { %1474 = vmatpush1.bf16.msra.mxu0 %v2943_v10 }
 0xfd2   :  { %1475 = vmatprep.subr.bf16.mxu0 %v2949_v32 }
 0xfd5   :  { %1476 = vmatpush1.bf16.msra.mxu0 %v2955_v61 }
 0xfd6   :  { %1477 = vmatprep.subr.bf16.mxu0 %v2961_v62 }
 0xfd9   :  { %1478 = vmatpush1.bf16.msra.mxu0 %v2967_v63 }
 0xfda   :  { %1655 = vmatprep.subr.bf16.mxu0 %v2860_v9 }
0x102c   :  { %v1336_v60 = vpop.permute.xlu0 %1335 }
0x1030   :  { %v1355_v14 = vpop.permute.xlu0 %1354 }
0x1031   :  { %vm1356_vm8 = vcmp.ne.s16.totalorder %v1355_v14, 0 }
0x108c   :  { %v1313_v1 = vpop.f32.mrf.mxu0 }
0x108d   :  { %v1320_v30 = vadd.f32 %v1313_v1, %v419_v51  ;;  %v2106_v51 = vcombine.low %v1443_v18, %v1443_v18 }
0x108e   :  { %v1315_v37 = vpop.f32.mrf.mxu0 }
0x108f   :  { %v1322_v7 = vsub.f32 0.0, %v1320_v30  ;;  %v1321_v13 = vadd.f32 %v1315_v37, %v421_v29  ;;  %v425_v29 = vadd.f32 %v2881_v41, %v2552_v48 }
0x1090   :  { %v1317_v31 = vpop.f32.mrf.mxu0 }
0x1091   :  { %v1324_v33 = vmul.f32 1.442695, %v1322_v7  ;;  %v1323_v21 = vsub.f32 0.0, %v1321_v13 }
0x1092   :  { %v1318_v15 = vpop.f32.mrf.mxu0 }
0x1093   :  { %v1326_v24 = vmul.f32 1.442695, %v1323_v21  ;;  %2250 = vpow2.f32 %v1324_v33 }
0x1095   :  { %2252 = vpow2.f32 %v1326_v24 }
0x10a0   :  { %v2251_v17 = vpop.eup %2250 }
0x10a1   :  { %v1328_v57 = vadd.f32 1.0, %v2251_v17 }
0x10a2   :  { %v2253_v36 = vpop.eup %2252 }
0x10a3   :  { %v1329_v19 = vadd.f32 1.0, %v2253_v36 }
0x10a5   :  { %2254 = vrcp.f32 %v1329_v19 }
0x10a6   :  { %2256 = vrcp.f32 %v1328_v57 }
0x10b2   :  { %v2255_v38 = vpop.eup %2254 }
0x10b3   :  { %v1332_v22 = vmul.f32 2.0, %v2255_v38  ;;  %v2257_v58 = vpop.eup %2256 }
0x10b4   :  { %v1338_v0 = vmul.f32 %v2257_v58, %v1336_v60 }
0x10b5   :  { %v2102_v39 = vadd.f32 -1.0, %v1332_v22 }
0x10b7   :  { %v1339_v59 = vmul.f32 %v2257_v58, %v2102_v39 }
0x10b9   :  { %1341 = vrot.lane.b32.xlu1 %v1339_v59, %s2365_s2 }
0x112b   :  { %v1342_v4 = vpop.permute.xlu1 %1341 }
0x112c   :  { %v1344_v11 = vadd.f32 %v1342_v4, %v1338_v0 }
0x112e   :  { %2258 = vtanh.f32 %v1344_v11  ;;  %1359 = vrot.lane.b32.xlu0 %v1344_v11, %s2365_s2 }
0x113b   :  { %v2259_v12 = vpop.eup %2258 }
0x113c   :  { %v1346_v56 = vmul.f32 %v2259_v12, %v2255_v38 }
0x113e   :  { %v1347_v20 = vpack.c.bf16 %v1346_v56, %v1346_v56 }
0x1140   :  { %v1357_v26 = vsel %vm1356_vm8, %v1347_v20, %v1265_v23  ;;  %v2375_v20 = vmov 5  }
0x1141   :  { %1366 = vrot.lane.b32.xlu1 %v1357_v26, %s2365_s2  ;;  %v3114_v8 = vsel %vm611_vm2, 10, %v2375_v20 }
0x1142   :  { %vm1533_vm12 = vcmp.gt.s32.totalorder %v2527_v35, %v3114_v8  ;;  %v433_v8 = vadd.f32 %v2887_v44, %v2550_v47 }
0x1143   :  { %vm1534_vm13 = vmpackc.low %vm1533_vm12, %vm1533_vm12 }
0x1144   :  { %v1535_v18 = vsel %vm1534_vm13, 65537, %v2362_v2 }
0x11a0   :  { %v1360_v28 = vpop.permute.xlu0 %1359 }
0x11a1   :  { %v1362_v23 = vsel %vm1349_vm5, %v1360_v28, %v1270_v16 }
0x11a2   :  { %1427 = vrot.lane.b32.xlu1 %v1362_v23, %s2365_s2 }
0x11a6   :  { %1446 = vrot.lane.b32.xlu1 %v2106_v51, %s2365_s2  ;;  %v2109_v51 = vcombine.low %v1535_v18, %v1535_v18 }
0x11b3   :  { %v1367_v1 = vpop.permute.xlu1 %1366 }
0x11b4   :  { %2104 = vmatmul.mubr.msk.bf16.vlgmr.msra.gmra.mxu1 %vm319_vm7, %v1367_v1 }
0x11b5   :  { %1564 = vmatpush1.bf16.msra.mxu1 %v2842_v34  ;;  %1587 = vmatprep.mubr.bf16.mxu1 %v2362_v2 }
0x11b6   :  { %1565 = vmatprep.subr.bf16.mxu1 %v2849_v5 }
0x11b9   :  { %1566 = vmatpush1.bf16.msra.mxu1 %v2943_v10 }
0x11ba   :  { %1567 = vmatprep.subr.bf16.mxu1 %v2949_v32 }
0x11bd   :  { %1568 = vmatpush1.bf16.msra.mxu1 %v2955_v61 }
0x11be   :  { %1569 = vmatprep.subr.bf16.mxu1 %v2961_v62 }
0x11c1   :  { %1570 = vmatpush1.bf16.msra.mxu1 %v2967_v63 }
0x11c2   :  { %1747 = vmatprep.subr.bf16.mxu1 %v2860_v9 }
0x1214   :  { %v1428_v58 = vpop.permute.xlu1 %1427 }
0x1218   :  { %v1447_v11 = vpop.permute.xlu1 %1446 }
0x1219   :  { %vm1448_vm11 = vcmp.ne.s16.totalorder %v1447_v11, 0  ;;  %v2376_v11 = vmov 4  }
0x1274   :  { %v1405_v16 = vpop.f32.mrf.mxu1 }
0x1275   :  { %v1412_v30 = vadd.f32 %v1405_v16, %v423_v27  ;;  %v431_v27 = vadd.f32 %v2885_v43, %v2552_v48 }
0x1276   :  { %v1407_v37 = vpop.f32.mrf.mxu1 }
0x1277   :  { %v1414_v7 = vsub.f32 0.0, %v1412_v30  ;;  %v1413_v13 = vadd.f32 %v1407_v37, %v425_v29 }
0x1278   :  { %v1409_v31 = vpop.f32.mrf.mxu1 }
0x1279   :  { %v1416_v33 = vmul.f32 1.442695, %v1414_v7  ;;  %v1415_v21 = vsub.f32 0.0, %v1413_v13 }
0x127a   :  { %v1410_v15 = vpop.f32.mrf.mxu1 }
0x127b   :  { %v1418_v24 = vmul.f32 1.442695, %v1415_v21  ;;  %2260 = vpow2.f32 %v1416_v33 }
0x127d   :  { %2262 = vpow2.f32 %v1418_v24 }
0x1288   :  { %v2261_v17 = vpop.eup %2260 }
0x1289   :  { %v1420_v57 = vadd.f32 1.0, %v2261_v17 }
0x128a   :  { %v2263_v36 = vpop.eup %2262 }
0x128b   :  { %v1421_v19 = vadd.f32 1.0, %v2263_v36 }
0x128d   :  { %2264 = vrcp.f32 %v1421_v19 }
0x128e   :  { %2266 = vrcp.f32 %v1420_v57 }
0x129a   :  { %v2265_v40 = vpop.eup %2264 }
0x129b   :  { %v1424_v38 = vmul.f32 2.0, %v2265_v40  ;;  %v2267_v22 = vpop.eup %2266 }
0x129c   :  { %v1430_v59 = vmul.f32 %v2267_v22, %v1428_v58 }
0x129d   :  { %v2105_v41 = vadd.f32 -1.0, %v1424_v38 }
0x129f   :  { %v1431_v39 = vmul.f32 %v2267_v22, %v2105_v41 }
0x12a1   :  { %1433 = vrot.lane.b32.xlu0 %v1431_v39, %s2365_s2 }
0x1313   :  { %v1434_v60 = vpop.permute.xlu0 %1433 }
0x1314   :  { %v1436_v0 = vadd.f32 %v1434_v60, %v1430_v59 }
0x1316   :  { %2268 = vtanh.f32 %v1436_v0  ;;  %1451 = vrot.lane.b32.xlu1 %v1436_v0, %s2365_s2 }
0x1323   :  { %v2269_v4 = vpop.eup %2268 }
0x1324   :  { %v1438_v12 = vmul.f32 %v2269_v4, %v2265_v40 }
0x1326   :  { %v1439_v14 = vpack.c.bf16 %v1438_v12, %v1438_v12  ;;  %v3147_v12 = vsel %vm611_vm2, 11, %v2376_v11  ;;  %v439_v11 = vadd.f32 %v2891_v46, %v2550_v47 }
0x1327   :  { %vm1625_vm15 = vcmp.gt.s32.totalorder %v2527_v35, %v3147_v12 }
0x1328   :  { %v1449_v56 = vsel %vm1448_vm11, %v1439_v14, %v1357_v26  ;;  %vm1626_vm0 = vmpackc.low %vm1625_vm15, %vm1625_vm15 }
0x1329   :  { %1458 = vrot.lane.b32.xlu0 %v1449_v56, %s2365_s2  ;;  %v1627_v20 = vsel %vm1626_vm0, 65537, %v2362_v2 }
0x1388   :  { %v1452_v28 = vpop.permute.xlu1 %1451 }
0x1389   :  { %v1454_v26 = vsel %vm1441_vm10, %v1452_v28, %v1362_v23  ;;  %v2112_v28 = vcombine.low %v1627_v20, %v1627_v20 }
0x138a   :  { %1519 = vrot.lane.b32.xlu0 %v1454_v26, %s2365_s2 }
0x138e   :  { %1538 = vrot.lane.b32.xlu0 %v2109_v51, %s2365_s2  ;;  %v435_v51 = vadd.f32 %v2889_v45, %v2552_v48 }
0x139b   :  { %v1459_v1 = vpop.permute.xlu0 %1458 }
0x139c   :  { %2107 = vmatmul.mubr.msk.bf16.vlgmr.msra.gmra.mxu0 %vm319_vm7, %v1459_v1 }
0x139d   :  { %1656 = vmatpush1.bf16.msra.mxu0 %v2842_v34  ;;  %1679 = vmatprep.mubr.bf16.mxu0 %v2362_v2 }
0x139e   :  { %1657 = vmatprep.subr.bf16.mxu0 %v2849_v5 }
0x13a1   :  { %1658 = vmatpush1.bf16.msra.mxu0 %v2943_v10 }
0x13a2   :  { %1659 = vmatprep.subr.bf16.mxu0 %v2949_v32 }
0x13a5   :  { %1660 = vmatpush1.bf16.msra.mxu0 %v2955_v61 }
0x13a6   :  { %1661 = vmatprep.subr.bf16.mxu0 %v2961_v62 }
0x13a9   :  { %1662 = vmatpush1.bf16.msra.mxu0 %v2967_v63 }
0x13aa   :  { %1839 = vmatprep.subr.bf16.mxu0 %v2860_v9 }
0x13fc   :  { %v1520_v38 = vpop.permute.xlu0 %1519 }
0x1400   :  { %v1539_v59 = vpop.permute.xlu0 %1538 }
0x1401   :  { %vm1540_vm14 = vcmp.ne.s16.totalorder %v1539_v59, 0 }
0x145c   :  { %v1497_v23 = vpop.f32.mrf.mxu0 }
0x145d   :  { %v1504_v16 = vadd.f32 %v1497_v23, %v429_v6 }
0x145e   :  { %v1499_v29 = vpop.f32.mrf.mxu0 }
0x145f   :  { %v1506_v30 = vsub.f32 0.0, %v1504_v16  ;;  %v1505_v37 = vadd.f32 %v1499_v29, %v431_v27 }
0x1460   :  { %v1501_v7 = vpop.f32.mrf.mxu0 }
0x1461   :  { %v1508_v13 = vmul.f32 1.442695, %v1506_v30  ;;  %v1507_v31 = vsub.f32 0.0, %v1505_v37 }
0x1462   :  { %v1502_v33 = vpop.f32.mrf.mxu0 }
0x1463   :  { %v1510_v21 = vmul.f32 1.442695, %v1507_v31  ;;  %2270 = vpow2.f32 %v1508_v13 }
0x1465   :  { %2272 = vpow2.f32 %v1510_v21 }
0x1470   :  { %v2271_v15 = vpop.eup %2270 }
0x1471   :  { %v1512_v36 = vadd.f32 1.0, %v2271_v15 }
0x1472   :  { %v2273_v24 = vpop.eup %2272 }
0x1473   :  { %v1513_v17 = vadd.f32 1.0, %v2273_v24 }
0x1475   :  { %2274 = vrcp.f32 %v1513_v17 }
0x1476   :  { %2276 = vrcp.f32 %v1512_v36 }
0x1482   :  { %v2275_v42 = vpop.eup %2274 }
0x1483   :  { %v1516_v19 = vmul.f32 2.0, %v2275_v42  ;;  %v2277_v57 = vpop.eup %2276 }
0x1484   :  { %v1522_v41 = vmul.f32 %v2277_v57, %v1520_v38 }
0x1485   :  { %v2108_v43 = vadd.f32 -1.0, %v1516_v19 }
0x1487   :  { %v1523_v40 = vmul.f32 %v2277_v57, %v2108_v43 }
0x1489   :  { %1525 = vrot.lane.b32.xlu1 %v1523_v40, %s2365_s2 }
0x14fb   :  { %v1526_v22 = vpop.permute.xlu1 %1525 }
0x14fc   :  { %v1528_v39 = vadd.f32 %v1526_v22, %v1522_v41  ;;  %v2377_v22 = vmov 3  }
0x14fe   :  { %2278 = vtanh.f32 %v1528_v39  ;;  %1543 = vrot.lane.b32.xlu0 %v1528_v39, %s2365_s2  ;;  %v3180_v39 = vsel %vm611_vm2, 12, %v2377_v22  ;;  %v445_v22 = vadd.f32 %v2897_v52, %v2552_v48 }
0x14ff   :  { %vm1717_vm3 = vcmp.gt.s32.totalorder %v2527_v35, %v3180_v39 }
0x1500   :  { %vm1718_vm4 = vmpackc.low %vm1717_vm3, %vm1717_vm3 }
0x150b   :  { %v2279_v58 = vpop.eup %2278 }
0x150c   :  { %v1530_v60 = vmul.f32 %v2279_v58, %v2275_v42 }
0x150e   :  { %v1531_v0 = vpack.c.bf16 %v1530_v60, %v1530_v60  ;;  %v1719_v60 = vsel %vm1718_vm4, 65537, %v2362_v2 }
0x1510   :  { %v1541_v4 = vsel %vm1540_vm14, %v1531_v0, %v1449_v56  ;;  %v2115_v0 = vcombine.low %v1719_v60, %v1719_v60 }
0x1511   :  { %1550 = vrot.lane.b32.xlu1 %v1541_v4, %s2365_s2 }
0x1570   :  { %v1544_v14 = vpop.permute.xlu0 %1543 }
0x1571   :  { %v1546_v56 = vsel %vm1533_vm12, %v1544_v14, %v1454_v26 }
0x1572   :  { %1611 = vrot.lane.b32.xlu1 %v1546_v56, %s2365_s2 }
0x1576   :  { %1630 = vrot.lane.b32.xlu1 %v2112_v28, %s2365_s2 }
0x1583   :  { %v1551_v18 = vpop.permute.xlu1 %1550 }
0x1584   :  { %2110 = vmatmul.mubr.msk.bf16.vlgmr.msra.gmra.mxu1 %vm319_vm7, %v1551_v18 }
0x1585   :  { %1748 = vmatpush1.bf16.msra.mxu1 %v2842_v34  ;;  %1771 = vmatprep.mubr.bf16.mxu1 %v2362_v2 }
0x1586   :  { %1749 = vmatprep.subr.bf16.mxu1 %v2849_v5 }
0x1589   :  { %1750 = vmatpush1.bf16.msra.mxu1 %v2943_v10 }
0x158a   :  { %1751 = vmatprep.subr.bf16.mxu1 %v2949_v32 }
0x158d   :  { %1752 = vmatpush1.bf16.msra.mxu1 %v2955_v61 }
0x158e   :  { %1753 = vmatprep.subr.bf16.mxu1 %v2961_v62 }
0x1591   :  { %1754 = vmatpush1.bf16.msra.mxu1 %v2967_v63 }
0x1592   :  { %1931 = vmatprep.subr.bf16.mxu1 %v2860_v9 }
0x15e4   :  { %v1612_v17 = vpop.permute.xlu1 %1611 }
0x15e8   :  { %v1631_v57 = vpop.permute.xlu1 %1630 }
0x15e9   :  { %vm1632_vm1 = vcmp.ne.s16.totalorder %v1631_v57, 0  ;;  %v2338_v57 = vld [vmem:[%s3289_s3 + $0x30] ss:$8 sps:$4 sm:$0xff]  }
0x1644   :  { %v1589_v26 = vpop.f32.mrf.mxu1 }
0x1645   :  { %v1596_v1 = vadd.f32 %v1589_v26, %v433_v8 }
0x1646   :  { %v1591_v6 = vpop.f32.mrf.mxu1 }
0x1647   :  { %v1598_v23 = vsub.f32 0.0, %v1596_v1  ;;  %v1597_v27 = vadd.f32 %v1591_v6, %v435_v51 }
0x1648   :  { %v1593_v16 = vpop.f32.mrf.mxu1 }
0x1649   :  { %v1600_v29 = vmul.f32 1.442695, %v1598_v23  ;;  %v1599_v30 = vsub.f32 0.0, %v1597_v27 }
0x164a   :  { %v1594_v37 = vpop.f32.mrf.mxu1 }
0x164b   :  { %v1602_v7 = vmul.f32 1.442695, %v1599_v30  ;;  %2280 = vpow2.f32 %v1600_v29 }
0x164d   :  { %2282 = vpow2.f32 %v1602_v7 }
0x1658   :  { %v2281_v13 = vpop.eup %2280 }
0x1659   :  { %v1604_v33 = vadd.f32 1.0, %v2281_v13 }
0x165a   :  { %v2283_v9 = vpop.eup %2282 }
0x165b   :  { %v1605_v31 = vadd.f32 1.0, %v2283_v9 }
0x165d   :  { %2284 = vrcp.f32 %v1605_v31 }
0x165e   :  { %2286 = vrcp.f32 %v1604_v33 }
0x166a   :  { %v2285_v44 = vpop.eup %2284 }
0x166b   :  { %v1608_v21 = vmul.f32 2.0, %v2285_v44  ;;  %v2287_v15 = vpop.eup %2286 }
0x166c   :  { %v1614_v36 = vmul.f32 %v2287_v15, %v1612_v17 }
0x166d   :  { %v2111_v45 = vadd.f32 -1.0, %v1608_v21 }
0x166f   :  { %v1615_v24 = vmul.f32 %v2287_v15, %v2111_v45  ;;  %v2378_v15 = vmov 2  }
0x1671   :  { %1617 = vrot.lane.b32.xlu0 %v1615_v24, %s2365_s2  ;;  %v3212_v24 = vsel %vm611_vm2, 13, %v2378_v15 }
0x1672   :  { %vm1809_vm6 = vcmp.gt.s32.totalorder %v2527_v35, %v3212_v24 }
0x1673   :  { %vm1810_vm8 = vmpackc.low %vm1809_vm6, %vm1809_vm6 }
0x16e3   :  { %v1618_v42 = vpop.permute.xlu0 %1617 }
0x16e4   :  { %v1620_v19 = vadd.f32 %v1618_v42, %v1614_v36  ;;  %v1811_v42 = vsel %vm1810_vm8, 65537, %v2362_v2 }
0x16e6   :  { %2288 = vtanh.f32 %v1620_v19  ;;  %1635 = vrot.lane.b32.xlu1 %v1620_v19, %s2365_s2  ;;  %v2118_v19 = vcombine.low %v1811_v42, %v1811_v42 }
0x16f3   :  { %v2289_v43 = vpop.eup %2288 }
0x16f4   :  { %v1622_v40 = vmul.f32 %v2289_v43, %v2285_v44 }
0x16f6   :  { %v1623_v38 = vpack.c.bf16 %v1622_v40, %v1622_v40  ;;  %v2339_v40 = vld [vmem:[%s3289_s3 + $0x24] ss:$8 sps:$4 sm:$0xff]   ;;  %s2380_s3 = smov [#allocation3]  }
0x16f7   :  { %s2014_s30 = sshll.u32 %s2380_s3, 4  ;;  %s2015_s30 = int_to_ptr.vmem [resolvable:$true] %s2014_s30 }
0x16f8   :  { %v1633_v41 = vsel %vm1632_vm1, %v1623_v38, %v1541_v4  ;;  %v443_v38 = vadd.f32 %v2895_v50, %v2550_v47  ;;  %s2340_s6 = scalar_lea.vmem %s2015_s30, 128  ;;  %p2345_p1 = scmp.lt.s32.totalorder %s2015_s30, %s2015_s30 }
0x16f9   :  { %1642 = vrot.lane.b32.xlu0 %v1633_v41, %s2365_s2  ;;  %p2341_p0 = scmp.ne.s32.totalorder %s2015_s30, %s2340_s6  ;;  %p2346_p2 = scmp.lt.s32.totalorder %s2340_s6, %s2340_s6 }
0x16fb   :  { %p2347_p3 = por %p2346_p2, %p2345_p1 }
0x16fd   :  { %p2348_p4 = pnand %p2347_p3, %p2341_p0 }
0x1758   :  { %v1636_v58 = vpop.permute.xlu1 %1635 }
0x1759   :  { %v1638_v59 = vsel %vm1625_vm15, %v1636_v58, %v1546_v56 }
0x175a   :  { %1703 = vrot.lane.b32.xlu0 %v1638_v59, %s2365_s2 }
0x175e   :  { %1722 = vrot.lane.b32.xlu0 %v2115_v0, %s2365_s2 }
0x176b   :  { %v1643_v4 = vpop.permute.xlu0 %1642 }
0x176c   :  { %2113 = vmatmul.mubr.msk.bf16.vlgmr.msra.gmra.mxu0 %vm319_vm7, %v1643_v4 }
0x176d   :  { %1840 = vmatpush1.bf16.msra.mxu0 %v2842_v34  ;;  %1863 = vmatprep.mubr.bf16.mxu0 %v2362_v2  ;;  %v441_v34 = vadd.f32 %v2893_v49, %v2552_v48 }
0x176e   :  { %1841 = vmatprep.subr.bf16.mxu0 %v2849_v5 }
0x1771   :  { %1842 = vmatpush1.bf16.msra.mxu0 %v2943_v10 }
0x1772   :  { %1843 = vmatprep.subr.bf16.mxu0 %v2949_v32 }
0x1775   :  { %1844 = vmatpush1.bf16.msra.mxu0 %v2955_v61 }
0x1776   :  { %1845 = vmatprep.subr.bf16.mxu0 %v2961_v62 }
0x1779   :  { %1846 = vmatpush1.bf16.msra.mxu0 %v2967_v63 }
0x17cc   :  { %v1704_v37 = vpop.permute.xlu0 %1703 }
0x17d0   :  { %v1723_v33 = vpop.permute.xlu0 %1722 }
0x17d1   :  { %vm1724_vm5 = vcmp.ne.s16.totalorder %v1723_v33, 0 }
0x182c   :  { %v1681_v12 = vpop.f32.mrf.mxu0 }
0x182d   :  { %v1688_v14 = vadd.f32 %v1681_v12, %v439_v11 }
0x182e   :  { %v1683_v56 = vpop.f32.mrf.mxu0 }
0x182f   :  { %v1690_v5 = vsub.f32 0.0, %v1688_v14  ;;  %v1689_v20 = vadd.f32 %v1683_v56, %v441_v34 }
0x1830   :  { %v1685_v28 = vpop.f32.mrf.mxu0 }
0x1831   :  { %v1692_v18 = vmul.f32 1.442695, %v1690_v5  ;;  %v1691_v8 = vsub.f32 0.0, %v1689_v20 }
0x1832   :  { %v1686_v26 = vpop.f32.mrf.mxu0 }
0x1833   :  { %v1694_v51 = vmul.f32 1.442695, %v1691_v8  ;;  %2290 = vpow2.f32 %v1692_v18 }
0x1835   :  { %2292 = vpow2.f32 %v1694_v51 }
0x1840   :  { %v2291_v1 = vpop.eup %2290 }
0x1841   :  { %v1696_v27 = vadd.f32 1.0, %v2291_v1 }
0x1842   :  { %v2293_v6 = vpop.eup %2292 }
0x1843   :  { %v1697_v23 = vadd.f32 1.0, %v2293_v6 }
0x1845   :  { %2294 = vrcp.f32 %v1697_v23  ;;  %v2379_v23 = vmov 1  }
0x1846   :  { %2296 = vrcp.f32 %v1696_v27  ;;  %v1900_v27 = vsel %vm611_vm2, 14, %v2379_v23 }
0x1847   :  { %vm1901_vm9 = vcmp.gt.s32.totalorder %v2527_v35, %v1900_v27 }
0x1848   :  { %vm1902_vm11 = vmpackc.low %vm1901_vm9, %vm1901_vm9 }
0x1852   :  { %v2295_v46 = vpop.eup %2294 }
0x1853   :  { %v1700_v16 = vmul.f32 2.0, %v2295_v46  ;;  %v2297_v29 = vpop.eup %2296 }
0x1854   :  { %v1706_v7 = vmul.f32 %v2297_v29, %v1704_v37  ;;  %v449_v37 = vadd.f32 %v2899_v53, %v2550_v47 }
0x1855   :  { %v2114_v49 = vadd.f32 -1.0, %v1700_v16 }
0x1857   :  { %v1707_v30 = vmul.f32 %v2297_v29, %v2114_v49  ;;  %v1903_v49 = vsel %vm1902_vm11, 65537, %v2362_v2 }
0x1858   :  { %v2121_v29 = vcombine.low %v1903_v49, %v1903_v49 }
0x1859   :  { %1709 = vrot.lane.b32.xlu1 %v1707_v30, %s2365_s2 }
0x18cb   :  { %v1710_v13 = vpop.permute.xlu1 %1709 }
0x18cc   :  { %v1712_v9 = vadd.f32 %v1710_v13, %v1706_v7  ;;  %v451_v13 = vadd.f32 %v2901_v3, %v2552_v48 }
0x18ce   :  { %2298 = vtanh.f32 %v1712_v9  ;;  %1727 = vrot.lane.b32.xlu0 %v1712_v9, %s2365_s2 }
0x18db   :  { %v2299_v31 = vpop.eup %2298 }
0x18dc   :  { %v1714_v44 = vmul.f32 %v2299_v31, %v2295_v46 }
0x18de   :  { %v1715_v21 = vpack.c.bf16 %v1714_v44, %v1714_v44 }
0x18e0   :  { %v1725_v45 = vsel %vm1724_vm5, %v1715_v21, %v1633_v41 }
0x18e1   :  { %1734 = vrot.lane.b32.xlu1 %v1725_v45, %s2365_s2 }
0x1940   :  { %v1728_v17 = vpop.permute.xlu0 %1727 }
0x1941   :  { %v1730_v36 = vsel %vm1717_vm3, %v1728_v17, %v1638_v59 }
0x1942   :  { %1795 = vrot.lane.b32.xlu1 %v1730_v36, %s2365_s2 }
0x1946   :  { %1814 = vrot.lane.b32.xlu1 %v2118_v19, %s2365_s2 }
0x1953   :  { %v1735_v43 = vpop.permute.xlu1 %1734 }
0x1954   :  { %2116 = vmatmul.mubr.msk.bf16.vlgmr.msra.gmra.mxu1 %vm319_vm7, %v1735_v43 }
0x1955   :  { %1932 = vmatpush1.bf16.msra.mxu1 %v2338_v57  ;;  %1955 = vmatprep.mubr.bf16.mxu1 %v2362_v2 }
0x1956   :  { %1933 = vmatprep.subr.bf16.mxu1 %v2339_v40 }
0x1959   :  { %1934 = vmatpush1.bf16.msra.mxu1 %v2943_v10 }
0x195a   :  { %1935 = vmatprep.subr.bf16.mxu1 %v2949_v32 }
0x195d   :  { %1936 = vmatpush1.bf16.msra.mxu1 %v2955_v61 }
0x195e   :  { %1937 = vmatprep.subr.bf16.mxu1 %v2961_v62 }
0x1961   :  { %1938 = vmatpush1.bf16.msra.mxu1 %v2967_v63 }
0x19b4   :  { %v1796_v5 = vpop.permute.xlu1 %1795 }
0x19b8   :  { %v1815_v26 = vpop.permute.xlu1 %1814 }
0x19b9   :  { %vm1816_vm10 = vcmp.ne.s16.totalorder %v1815_v26, 0 }
0x1a14   :  { %v1773_v41 = vpop.f32.mrf.mxu1 }
0x1a15   :  { %v1780_v39 = vadd.f32 %v1773_v41, %v443_v38 }
0x1a16   :  { %v1775_v58 = vpop.f32.mrf.mxu1 }
0x1a17   :  { %v1782_v59 = vsub.f32 0.0, %v1780_v39  ;;  %v1781_v60 = vadd.f32 %v1775_v58, %v445_v22 }
0x1a18   :  { %v1777_v10 = vpop.f32.mrf.mxu1 }
0x1a19   :  { %v1784_v0 = vmul.f32 1.442695, %v1782_v59  ;;  %v1783_v32 = vsub.f32 0.0, %v1781_v60 }
0x1a1a   :  { %v1778_v4 = vpop.f32.mrf.mxu1 }
0x1a1b   :  { %v1786_v61 = vmul.f32 1.442695, %v1783_v32  ;;  %2300 = vpow2.f32 %v1784_v0  ;;  %v1992_v4 = vsel %vm611_vm2, 15, %v2362_v2 }
0x1a1c   :  { %vm1993_vm13 = vcmp.gt.s32.totalorder %v2527_v35, %v1992_v4 }
0x1a1d   :  { %2302 = vpow2.f32 %v1786_v61  ;;  %vm1994_vm14 = vmpackc.low %vm1993_vm13, %vm1993_vm13 }
0x1a28   :  { %v2301_v62 = vpop.eup %2300 }
0x1a29   :  { %v1788_v12 = vadd.f32 1.0, %v2301_v62 }
0x1a2a   :  { %v2303_v63 = vpop.eup %2302 }
0x1a2b   :  { %v1789_v11 = vadd.f32 1.0, %v2303_v63  ;;  %v1995_v63 = vsel %vm1994_vm14, 65537, %v2362_v2 }
0x1a2d   :  { %2304 = vrcp.f32 %v1789_v11  ;;  %v2124_v11 = vcombine.low %v1995_v63, %v1995_v63 }
0x1a2e   :  { %2306 = vrcp.f32 %v1788_v12 }
0x1a3a   :  { %v2305_v50 = vpop.eup %2304 }
0x1a3b   :  { %v1792_v34 = vmul.f32 2.0, %v2305_v50  ;;  %v2307_v14 = vpop.eup %2306 }
0x1a3c   :  { %v1798_v20 = vmul.f32 %v2307_v14, %v1796_v5 }
0x1a3d   :  { %v2117_v52 = vadd.f32 -1.0, %v1792_v34  ;;  %v455_v34 = vadd.f32 %v2905_v55, %v2552_v48 }
0x1a3f   :  { %v1799_v56 = vmul.f32 %v2307_v14, %v2117_v52 }
0x1a41   :  { %1801 = vrot.lane.b32.xlu0 %v1799_v56, %s2365_s2 }
0x1ab3   :  { %v1802_v28 = vpop.permute.xlu0 %1801 }
0x1ab4   :  { %v1804_v18 = vadd.f32 %v1802_v28, %v1798_v20 }
0x1ab6   :  { %2308 = vtanh.f32 %v1804_v18  ;;  %1819 = vrot.lane.b32.xlu1 %v1804_v18, %s2365_s2 }
0x1ac3   :  { %v2309_v8 = vpop.eup %2308 }
0x1ac4   :  { %v1806_v51 = vmul.f32 %v2309_v8, %v2305_v50 }
0x1ac6   :  { %v1807_v1 = vpack.c.bf16 %v1806_v51, %v1806_v51 }
0x1ac8   :  { %v1817_v6 = vsel %vm1816_vm10, %v1807_v1, %v1725_v45 }
0x1ac9   :  { %1826 = vrot.lane.b32.xlu0 %v1817_v6, %s2365_s2 }
0x1b28   :  { %v1820_v46 = vpop.permute.xlu1 %1819 }
0x1b29   :  { %v1822_v16 = vsel %vm1809_vm6, %v1820_v46, %v1730_v36 }
0x1b2a   :  { %1887 = vrot.lane.b32.xlu0 %v1822_v16, %s2365_s2 }
0x1b2e   :  { %1906 = vrot.lane.b32.xlu0 %v2121_v29, %s2365_s2 }
0x1b3b   :  { %v1827_v30 = vpop.permute.xlu0 %1826 }
0x1b3c   :  { %2119 = vmatmul.mubr.msk.bf16.vlgmr.msra.gmra.mxu0 %vm319_vm7, %v1827_v30 }
0x1b9c   :  { %v1888_v41 = vpop.permute.xlu0 %1887 }
0x1ba0   :  { %v1907_v60 = vpop.permute.xlu0 %1906 }
0x1ba1   :  { %vm1908_vm12 = vcmp.ne.s16.totalorder %v1907_v60, 0 }
0x1bfc   :  { %v1865_v7 = vpop.f32.mrf.mxu0 }
0x1bfd   :  { %v1872_v9 = vadd.f32 %v1865_v7, %v449_v37 }
0x1bfe   :  { %v1867_v31 = vpop.f32.mrf.mxu0 }
0x1bff   :  { %v1874_v33 = vsub.f32 0.0, %v1872_v9  ;;  %v1873_v44 = vadd.f32 %v1867_v31, %v451_v13 }
0x1c00   :  { %v1869_v21 = vpop.f32.mrf.mxu0 }
0x1c01   :  { %v1876_v45 = vmul.f32 1.442695, %v1874_v33  ;;  %v1875_v15 = vsub.f32 0.0, %v1873_v44 }
0x1c02   :  { %v1870_v24 = vpop.f32.mrf.mxu0 }
0x1c03   :  { %v1878_v17 = vmul.f32 1.442695, %v1875_v15  ;;  %2310 = vpow2.f32 %v1876_v45 }
0x1c05   :  { %2312 = vpow2.f32 %v1878_v17 }
0x1c10   :  { %v2311_v36 = vpop.eup %2310 }
0x1c11   :  { %v1880_v43 = vadd.f32 1.0, %v2311_v36 }
0x1c12   :  { %v2313_v42 = vpop.eup %2312 }
0x1c13   :  { %v1881_v19 = vadd.f32 1.0, %v2313_v42 }
0x1c15   :  { %2314 = vrcp.f32 %v1881_v19 }
0x1c16   :  { %2316 = vrcp.f32 %v1880_v43 }
0x1c22   :  { %v2315_v53 = vpop.eup %2314 }
0x1c23   :  { %v1884_v57 = vmul.f32 2.0, %v2315_v53  ;;  %v2317_v40 = vpop.eup %2316 }
0x1c24   :  { %v1890_v22 = vmul.f32 %v2317_v40, %v1888_v41 }
0x1c25   :  { %v2120_v3 = vadd.f32 -1.0, %v1884_v57 }
0x1c27   :  { %v1891_v38 = vmul.f32 %v2317_v40, %v2120_v3 }
0x1c29   :  { %1893 = vrot.lane.b32.xlu1 %v1891_v38, %s2365_s2 }
0x1c9b   :  { %v1894_v39 = vpop.permute.xlu1 %1893 }
0x1c9c   :  { %v1896_v58 = vadd.f32 %v1894_v39, %v1890_v22 }
0x1c9e   :  { %2318 = vtanh.f32 %v1896_v58  ;;  %1911 = vrot.lane.b32.xlu0 %v1896_v58, %s2365_s2 }
0x1cab   :  { %v2319_v59 = vpop.eup %2318 }
0x1cac   :  { %v1898_v10 = vmul.f32 %v2319_v59, %v2315_v53 }
0x1cae   :  { %v1899_v0 = vpack.c.bf16 %v1898_v10, %v1898_v10 }
0x1cb0   :  { %v1909_v32 = vsel %vm1908_vm12, %v1899_v0, %v1817_v6 }
0x1cb1   :  { %1918 = vrot.lane.b32.xlu1 %v1909_v32, %s2365_s2 }
0x1d10   :  { %v1912_v61 = vpop.permute.xlu0 %1911 }
0x1d11   :  { %v1914_v62 = vsel %vm1901_vm9, %v1912_v61, %v1822_v16 }
0x1d12   :  { %1979 = vrot.lane.b32.xlu1 %v1914_v62, %s2365_s2 }
0x1d16   :  { %1998 = vrot.lane.b32.xlu1 %v2124_v11, %s2365_s2 }
0x1d23   :  { %v1919_v12 = vpop.permute.xlu1 %1918 }
0x1d24   :  { %2122 = vmatmul.mubr.msk.bf16.vlgmr.msra.gmra.mxu1 %vm319_vm7, %v1919_v12 }
0x1d84   :  { %v1980_v23 = vpop.permute.xlu1 %1979 }
0x1d88   :  { %v1999_v29 = vpop.permute.xlu1 %1998 }
0x1d89   :  { %vm2000_vm2 = vcmp.ne.s16.totalorder %v1999_v29, 0 }
0x1de4   :  { %v1957_v50 = vpop.f32.mrf.mxu1 }
0x1de5   :  { %v1964_v52 = vadd.f32 %v1957_v50, %v453_v25 }
0x1de6   :  { %v1959_v35 = vpop.f32.mrf.mxu1 }
0x1de7   :  { %v1966_v14 = vsub.f32 0.0, %v1964_v52  ;;  %v1965_v56 = vadd.f32 %v1959_v35, %v455_v34 }
0x1de8   :  { %v1961_v2 = vpop.f32.mrf.mxu1 }
0x1de9   :  { %v1968_v5 = vmul.f32 1.442695, %v1966_v14  ;;  %v1967_v20 = vsub.f32 0.0, %v1965_v56 }
0x1dea   :  { %v1962_v28 = vpop.f32.mrf.mxu1 }
0x1deb   :  { %v1970_v18 = vmul.f32 1.442695, %v1967_v20  ;;  %2320 = vpow2.f32 %v1968_v5 }
0x1ded   :  { %2322 = vpow2.f32 %v1970_v18 }
0x1df8   :  { %v2321_v8 = vpop.eup %2320 }
0x1df9   :  { %v1972_v1 = vadd.f32 1.0, %v2321_v8 }
0x1dfa   :  { %v2323_v26 = vpop.eup %2322 }
0x1dfb   :  { %v1973_v51 = vadd.f32 1.0, %v2323_v26 }
0x1dfd   :  { %2324 = vrcp.f32 %v1973_v51 }
0x1dfe   :  { %2326 = vrcp.f32 %v1972_v1 }
0x1e0a   :  { %v2325_v47 = vpop.eup %2324 }
0x1e0b   :  { %v1976_v54 = vmul.f32 2.0, %v2325_v47  ;;  %v2327_v55 = vpop.eup %2326 }
0x1e0c   :  { %v1982_v27 = vmul.f32 %v2327_v55, %v1980_v23 }
0x1e0d   :  { %v2123_v48 = vadd.f32 -1.0, %v1976_v54 }
0x1e0f   :  { %v1983_v6 = vmul.f32 %v2327_v55, %v2123_v48 }
0x1e11   :  { %1985 = vrot.lane.b32.xlu0 %v1983_v6, %s2365_s2 }
0x1e83   :  { %v1986_v46 = vpop.permute.xlu0 %1985 }
0x1e84   :  { %v1988_v16 = vadd.f32 %v1986_v46, %v1982_v27 }
0x1e86   :  { %2328 = vtanh.f32 %v1988_v16 }
0x1e93   :  { %v2329_v49 = vpop.eup %2328 }
0x1e94   :  { %v1990_v30 = vmul.f32 %v2329_v49, %v2325_v47 }
0x1e96   :  { %v1991_v37 = vpack.c.bf16 %v1990_v30, %v1990_v30 }
0x1e98   :  { %v2001_v7 = vsel %vm2000_vm2, %v1991_v37, %v1909_v32 }
0x1e99   :  { %v2002_v13 = vunpack.c.l.bf16 %v2001_v7 }
0x1e9b   :  { %2004 = vrot.lane.b32.xlu0 %v2002_v13, %s2365_s2 }
0x1f0d   :  { %v2005_v9 = vpop.permute.xlu0 %2004 }
0x1f0e   :  { %2007 = vst.msk [vmem:[#allocation3] sm:$0xff] %vm319_vm7, %v2005_v9 }
0x1f0f   :  { %2351 = shalt.err (!%p2348_p4)
}
0x1f10   :  { %2017 = dma.vmem_to_hbm [thread:$0]  %s2015_s30, 128, %s3291_s5, [#allocation4]  }
0x1f11   :  { %2360 = dma.done.wait [#allocation4], 128  }
0x1f12   :  { %2361 = vsyncadd [#allocation4], 4294967168 }
0x1f13   :  { %2021 = vsyncpa [#allocation4], 1 }

</bundles_post_ra>
